<compile_context>
chip_gen: v7x
topology: tpu7x:2x2x1
jax: 0.10.0
libtpu: 0.0.40
codegen_flags: <defaults>
</compile_context>

<pallas_src>
import jax
import jax.numpy as jnp
from jax.experimental import pallas as pl
from jax.experimental.pallas import tpu as pltpu

# Problem sizes (consistent with the module: 4 input channels, 16x16 patches).
H = 16
W = 16                       # power of two (we use shift/mask index math)
C_IN, C1, C2, C_OUT = 4, 32, 64, 1
P = H * W                    # flattened spatial size per image (256)
K1 = 9 * C_IN                # im2col contraction dim of conv1 (36)
K2 = 9 * C1                  # im2col contraction dim of conv2 (288)
_W_SHIFT = W.bit_length() - 1


def fire_patch_kernel(x_ref, w1_ref, b1_ref, w2_ref, b2_ref, w3_ref, b3_ref,
                      o_ref, patches_ref):
    """One block of B images per grid step, channels-on-sublanes layout.

    x_ref      : (1, 36, M)  bf16  conv1 im2col'd input, M = B*P lane columns
    w1_ref     : (32, 36)    bf16  conv1 weights, [co, k*C_IN + ci]
    b1_ref     : (32, 1)     f32
    w2_ref     : (64, 288)   bf16  conv2 weights, [co, k*C1 + ci]
    b2_ref     : (64, 1)     f32
    w3_ref     : (1, 64)     bf16  1x1 conv weights
    b3_ref     : (1, 1)      f32
    o_ref      : (1, 1, M)   f32   lane-dense output row
    patches_ref: (288, M)    bf16  VMEM scratch for conv2 im2col
    """
    M = x_ref.shape[2]

    # ---- conv1: single (32, 36) @ (36, M) MXU matmul (im2col done in wrapper).
    h1 = jnp.dot(w1_ref[...], x_ref[0], preferred_element_type=jnp.float32)
    h1 = jnp.maximum(h1 + b1_ref[...], 0.0)                     # (C1, M) f32

    # ---- Lane-dense spatial coordinates of every column (computed once).
    m_idx = jax.lax.broadcasted_iota(jnp.int32, (1, M), 1)
    p_idx = m_idx & (P - 1)            # position within its image
    hh = p_idx >> _W_SHIFT             # row
    ww = p_idx & (W - 1)               # col

    # ---- conv2 im2col: 9 lane-rolled + masked copies of h1 packed into one
    #      (288, M) bf16 scratch.  Roll wrap across image/batch boundaries is
    #      exactly the set of columns the hh/ww mask zeroes, so SAME padding
    #      is preserved even with the batch folded onto the lane axis.
    for k in range(9):
        oy = k // 3 - 1
        ox = k % 3 - 1
        s = oy * W + ox                # flat offset of this tap
        if s == 0:
            shifted = h1
        else:
            # shifted[:, m] == h1[:, (m + s) mod M]
            shifted = pltpu.roll(h1, shift=(-s) % M, axis=1)
        hv = hh + oy
        wv = ww + ox
        valid = (hv >= 0) & (hv < H) & (wv >= 0) & (wv < W)      # (1, M)
        patches_ref[k * C1:(k + 1) * C1, :] = (
            jnp.where(valid, shifted, 0.0).astype(jnp.bfloat16))

    # ---- conv2: single (64, 288) @ (288, M) MXU matmul.
    h2 = jnp.dot(w2_ref[...], patches_ref[...],
                 preferred_element_type=jnp.float32)
    h2 = jnp.maximum(h2 + b2_ref[...], 0.0)                      # (C2, M) f32

    # ---- conv3 (1x1) + sigmoid; output is a lane-dense (1, M) row.
    logits = jnp.dot(w3_ref[...], h2.astype(jnp.bfloat16),
                     preferred_element_type=jnp.float32) + b3_ref[...]
    o_ref[0] = jax.nn.sigmoid(logits)


def _im2col_nchw(x):
    """(n, C, H, W) -> (n, 9*C, H*W), rows ordered (tap k)*C + channel."""
    n, c, h, w = x.shape
    xp = jnp.pad(x, ((0, 0), (0, 0), (1, 1), (1, 1)))
    cols = []
    for k in range(9):
        oy, ox = k // 3, k % 3
        cols.append(xp[:, :, oy:oy + h, ox:ox + w])
    return jnp.concatenate(cols, axis=1).reshape(n, 9 * c, h * w)


def fire_patch_cnn(x_nchw, params, batch_block=32):
    """Wrapper: NCHW in, NCHW out (matches the PyTorch module).

    batch_block: images per grid step.  ~32 keeps live VMEM well under the
    32 MiB scoped default (v7x-safe); the test's tiny batch is handled too.
    """
    w1, b1, w2, b2, w3, b3 = params
    n, c, h, w = x_nchw.shape
    assert (c, h, w) == (C_IN, H, W)

    B = min(batch_block, n)
    G = pl.cdiv(n, B)
    n_pad = G * B
    M = B * P

    x = x_nchw.astype(jnp.float32)
    if n_pad != n:
        x = jnp.pad(x, ((0, n_pad - n), (0, 0), (0, 0), (0, 0)))

    # Layout plumbing (wrapper-side, cheap XLA glue):
    #  - conv1 im2col: (n, 4, 16, 16) -> (n, 36, 256)
    #  - fold the batch block onto the lane axis: column m = b*P + p
    x36 = _im2col_nchw(x)                                            # (n_pad, 36, P)
    xk = (x36.reshape(G, B, K1, P)
              .transpose(0, 2, 1, 3)
              .reshape(G, K1, M)
              .astype(jnp.bfloat16))

    # Weights as (Cout, K) bf16 so each conv is one (Cout,K)@(K,M) matmul.
    w1t = w1.reshape(K1, C1).T.astype(jnp.bfloat16)                  # (32, 36)
    w2t = w2.reshape(K2, C2).T.astype(jnp.bfloat16)                  # (64, 288)
    w3t = w3.reshape(C2, C_OUT).T.astype(jnp.bfloat16)               # (1, 64)
    b1c = b1.reshape(C1, 1).astype(jnp.float32)
    b2c = b2.reshape(C2, 1).astype(jnp.float32)
    b3c = b3.reshape(C_OUT, 1).astype(jnp.float32)

    out = pl.pallas_call(
        fire_patch_kernel,
        out_shape=jax.ShapeDtypeStruct((G, 1, M), jnp.float32),
        grid=(G,),
        in_specs=[
            pl.BlockSpec((1, K1, M), lambda i: (i, 0, 0)),
            pl.BlockSpec((C1, K1), lambda i: (0, 0)),
            pl.BlockSpec((C1, 1), lambda i: (0, 0)),
            pl.BlockSpec((C2, K2), lambda i: (0, 0)),
            pl.BlockSpec((C2, 1), lambda i: (0, 0)),
            pl.BlockSpec((C_OUT, C2), lambda i: (0, 0)),
            pl.BlockSpec((C_OUT, 1), lambda i: (0, 0)),
        ],
        out_specs=pl.BlockSpec((1, 1, M), lambda i: (i, 0, 0)),
        scratch_shapes=[pltpu.VMEM((K2, M), jnp.bfloat16)],
        compiler_params=pltpu.CompilerParams(
            dimension_semantics=("parallel",)),
    )(xk, w1t, b1c, w2t, b2c, w3t, b3c)

    # (G, 1, B*P) -> (n, 1, H, W)
    out = out.reshape(n_pad, H, W)[:n]
    return out[:, None, :, :]


def fire_patch_cnn_reference(x_nchw, params):
    """Pure-JAX reference (lax conv), NCHW in/out — mirrors PyTorch exactly."""
    w1, b1, w2, b2, w3, b3 = params
    x = jnp.transpose(x_nchw, (0, 2, 3, 1)).astype(jnp.float32)      # NHWC

    def conv(inp, w_flat, b, k):
        cin, cout = w_flat.shape[-2], w_flat.shape[-1]
        w_hwio = w_flat.reshape(k, k, cin, cout)
        y = jax.lax.conv_general_dilated(
            inp, w_hwio, window_strides=(1, 1), padding="SAME",
            dimension_numbers=("NHWC", "HWIO", "NHWC"))
        return y + b.reshape(1, 1, 1, cout)

    h1 = jax.nn.relu(conv(x, w1, b1, 3))
    h2 = jax.nn.relu(conv(h1, w2, b2, 3))
    y = jax.nn.sigmoid(conv(h2, w3, b3, 1))
    return jnp.transpose(y, (0, 3, 1, 2))


def init_params(key):
    """Deterministic synthetic parameters (shapes match the nn.Module)."""
    k1, k2, k3, k4, k5, k6 = jax.random.split(key, 6)
    w1 = jax.random.normal(k1, (9, C_IN, C1), jnp.float32) * 0.10
    b1 = jax.random.normal(k2, (C1,), jnp.float32) * 0.05
    w2 = jax.random.normal(k3, (9, C1, C2), jnp.float32) * 0.05
    b2 = jax.random.normal(k4, (C2,), jnp.float32) * 0.05
    w3 = jax.random.normal(k5, (C2, C_OUT), jnp.float32) * 0.10
    b3 = jax.random.normal(k6, (C_OUT,), jnp.float32) * 0.05
    return (w1, b1, w2, b2, w3, b3)


if __name__ == "__main__":
    key = jax.random.PRNGKey(0)
    k_param, k_x = jax.random.split(key)
    params = init_params(k_param)

    # PyTorch-style NCHW input: batch=2, channels=4, spatial=16x16.
    x = jax.random.normal(k_x, (2, C_IN, H, W), jnp.float32)

    out = jax.block_until_ready(fire_patch_cnn(x, params))
    ref = jax.block_until_ready(fire_patch_cnn_reference(x, params))

    assert out.shape == (2, C_OUT, H, W), out.shape
    assert jnp.all(jnp.isfinite(out))
    # Loose tolerance: bf16 MXU operands vs XLA conv default precision.
    assert jnp.allclose(out, ref, atol=5e-2, rtol=0.0), \
        f"max abs diff {float(jnp.max(jnp.abs(out - ref)))}"

    # Also exercise the batched multi-grid-step + batch-padding path.
    x_big = jax.random.normal(jax.random.PRNGKey(1), (10, C_IN, H, W),
                              jnp.float32)
    out_big = jax.block_until_ready(
        fire_patch_cnn(x_big, params, batch_block=4))
    ref_big = fire_patch_cnn_reference(x_big, params)
    assert out_big.shape == (10, C_OUT, H, W)
    assert jnp.allclose(out_big, ref_big, atol=5e-2, rtol=0.0), \
        f"max abs diff {float(jnp.max(jnp.abs(out_big - ref_big)))}"

    print("KERNEL_OK")
</pallas_src>

<mosaic_0001>
module attributes {stable_mosaic.version = 11 : i64} {
  func.func @fire_patch_kernel(%arg0: i32, %arg1: memref<1x36x512xbf16, #tpu.memory_space<vmem>>, %arg2: memref<32x36xbf16, #tpu.memory_space<vmem>>, %arg3: memref<32x1xf32, #tpu.memory_space<vmem>>, %arg4: memref<64x288xbf16, #tpu.memory_space<vmem>>, %arg5: memref<64x1xf32, #tpu.memory_space<vmem>>, %arg6: memref<1x64xbf16, #tpu.memory_space<vmem>>, %arg7: memref<1x1xf32, #tpu.memory_space<vmem>>, %arg8: memref<1x1x512xf32, #tpu.memory_space<vmem>>, %arg9: memref<288x512xbf16, #tpu.memory_space<vmem>>) attributes {dimension_semantics = [#tpu.dimension_semantics<parallel>], iteration_bounds = array<i64: 1>, scalar_prefetch = 0 : i64, scratch_operands = 1 : i64, tpu.core_type = #tpu.core_type<tc>, window_params = [{transform_indices = @transform_0, window_bounds = array<i64: 1, 36, 512>}, {pipeline_mode = #tpu.pipeline_mode<synchronous>, transform_indices = @transform_1, window_bounds = array<i64: 32, 36>}, {pipeline_mode = #tpu.pipeline_mode<synchronous>, transform_indices = @transform_2, window_bounds = array<i64: 32, 1>}, {pipeline_mode = #tpu.pipeline_mode<synchronous>, transform_indices = @transform_3, window_bounds = array<i64: 64, 288>}, {pipeline_mode = #tpu.pipeline_mode<synchronous>, transform_indices = @transform_4, window_bounds = array<i64: 64, 1>}, {pipeline_mode = #tpu.pipeline_mode<synchronous>, transform_indices = @transform_5, window_bounds = array<i64: 1, 64>}, {pipeline_mode = #tpu.pipeline_mode<synchronous>, transform_indices = @transform_6, window_bounds = array<i64: 1, 1>}, {transform_indices = @transform_7, window_bounds = array<i64: 1, 1, 512>}]} {
    %c0 = arith.constant 0 : index
    %c0_0 = arith.constant 0 : index
    %0 = vector.load %arg2[%c0, %c0_0] : memref<32x36xbf16, #tpu.memory_space<vmem>>, vector<32x36xbf16>
    %c0_1 = arith.constant 0 : index
    %c0_2 = arith.constant 0 : index
    %c0_3 = arith.constant 0 : index
    %1 = vector.load %arg1[%c0_1, %c0_2, %c0_3] : memref<1x36x512xbf16, #tpu.memory_space<vmem>>, vector<1x36x512xbf16>
    %2 = vector.shape_cast %1 : vector<1x36x512xbf16> to vector<36x512xbf16>
    %cst = arith.constant dense<0.000000e+00> : vector<32x512xf32>
    %3 = tpu.matmul %0, %2, %cst {dimension_numbers = #tpu.dot_dimension_numbers<[1], [0], [0], [1], [0, 0, 1, 1], [], []>} : vector<32x36xbf16>, vector<36x512xbf16>, vector<32x512xf32> -> vector<32x512xf32>
    %c0_4 = arith.constant 0 : index
    %c0_5 = arith.constant 0 : index
    %4 = vector.load %arg3[%c0_4, %c0_5] : memref<32x1xf32, #tpu.memory_space<vmem>>, vector<32x1xf32>
    %5 = vector.broadcast %4 : vector<32x1xf32> to vector<32x512xf32>
    %6 = arith.addf %3, %5 : vector<32x512xf32>
    %cst_6 = arith.constant 0.000000e+00 : f32
    %7 = vector.broadcast %cst_6 : f32 to vector<32x512xf32>
    %8 = arith.maximumf %6, %7 : vector<32x512xf32>
    %9 = tpu.iota {dimensions = array<i32: 1>} : vector<1x512xi32>
    %c255_i32 = arith.constant 255 : i32
    %10 = vector.broadcast %c255_i32 : i32 to vector<1x512xi32>
    %11 = arith.andi %9, %10 : vector<1x512xi32>
    %c4_i32 = arith.constant 4 : i32
    %12 = vector.broadcast %c4_i32 : i32 to vector<1x512xi32>
    %13 = arith.shrsi %11, %12 : vector<1x512xi32>
    %c15_i32 = arith.constant 15 : i32
    %14 = vector.broadcast %c15_i32 : i32 to vector<1x512xi32>
    %15 = arith.andi %11, %14 : vector<1x512xi32>
    %c17_i32 = arith.constant 17 : i32
    %16 = tpu.dynamic_rotate %8 by %c17_i32 dim 1 : vector<32x512xf32>, i32 -> vector<32x512xf32>
    %c-1_i32 = arith.constant -1 : i32
    %17 = vector.broadcast %c-1_i32 : i32 to vector<1x512xi32>
    %18 = arith.addi %13, %17 : vector<1x512xi32>
    %c-1_i32_7 = arith.constant -1 : i32
    %19 = vector.broadcast %c-1_i32_7 : i32 to vector<1x512xi32>
    %20 = arith.addi %15, %19 : vector<1x512xi32>
    %c0_i32 = arith.constant 0 : i32
    %21 = vector.broadcast %c0_i32 : i32 to vector<1x512xi32>
    %22 = arith.cmpi sge, %18, %21 : vector<1x512xi32>
    %c16_i32 = arith.constant 16 : i32
    %23 = vector.broadcast %c16_i32 : i32 to vector<1x512xi32>
    %24 = arith.cmpi slt, %18, %23 : vector<1x512xi32>
    %25 = arith.andi %22, %24 : vector<1x512xi1>
    %c0_i32_8 = arith.constant 0 : i32
    %26 = vector.broadcast %c0_i32_8 : i32 to vector<1x512xi32>
    %27 = arith.cmpi sge, %20, %26 : vector<1x512xi32>
    %28 = arith.andi %25, %27 : vector<1x512xi1>
    %c16_i32_9 = arith.constant 16 : i32
    %29 = vector.broadcast %c16_i32_9 : i32 to vector<1x512xi32>
    %30 = arith.cmpi slt, %20, %29 : vector<1x512xi32>
    %31 = arith.andi %28, %30 : vector<1x512xi1>
    %cst_10 = arith.constant 0.000000e+00 : f32
    %32 = vector.shape_cast %31 : vector<1x512xi1> to vector<1x512xi1>
    %33 = vector.broadcast %32 : vector<1x512xi1> to vector<32x512xi1>
    %34 = vector.broadcast %cst_10 : f32 to vector<32x512xf32>
    %35 = arith.select %33, %16, %34 : vector<32x512xi1>, vector<32x512xf32>
    %36 = arith.truncf %35 : vector<32x512xf32> to vector<32x512xbf16>
    %c0_11 = arith.constant 0 : index
    %c0_12 = arith.constant 0 : index
    %37 = vector.load %arg9[%c0_11, %c0_12] : memref<288x512xbf16, #tpu.memory_space<vmem>>, vector<32x512xbf16>
    tpu.vector_store %arg9[%c0_11, %c0_12], %36 {strides = array<i32>} : memref<288x512xbf16, #tpu.memory_space<vmem>>, vector<32x512xbf16>,
    %c16_i32_13 = arith.constant 16 : i32
    %38 = tpu.dynamic_rotate %8 by %c16_i32_13 dim 1 : vector<32x512xf32>, i32 -> vector<32x512xf32>
    %c-1_i32_14 = arith.constant -1 : i32
    %39 = vector.broadcast %c-1_i32_14 : i32 to vector<1x512xi32>
    %40 = arith.addi %13, %39 : vector<1x512xi32>
    %c0_i32_15 = arith.constant 0 : i32
    %41 = vector.broadcast %c0_i32_15 : i32 to vector<1x512xi32>
    %42 = arith.addi %15, %41 : vector<1x512xi32>
    %c0_i32_16 = arith.constant 0 : i32
    %43 = vector.broadcast %c0_i32_16 : i32 to vector<1x512xi32>
    %44 = arith.cmpi sge, %40, %43 : vector<1x512xi32>
    %c16_i32_17 = arith.constant 16 : i32
    %45 = vector.broadcast %c16_i32_17 : i32 to vector<1x512xi32>
    %46 = arith.cmpi slt, %40, %45 : vector<1x512xi32>
    %47 = arith.andi %44, %46 : vector<1x512xi1>
    %c0_i32_18 = arith.constant 0 : i32
    %48 = vector.broadcast %c0_i32_18 : i32 to vector<1x512xi32>
    %49 = arith.cmpi sge, %42, %48 : vector<1x512xi32>
    %50 = arith.andi %47, %49 : vector<1x512xi1>
    %c16_i32_19 = arith.constant 16 : i32
    %51 = vector.broadcast %c16_i32_19 : i32 to vector<1x512xi32>
    %52 = arith.cmpi slt, %42, %51 : vector<1x512xi32>
    %53 = arith.andi %50, %52 : vector<1x512xi1>
    %cst_20 = arith.constant 0.000000e+00 : f32
    %54 = vector.shape_cast %53 : vector<1x512xi1> to vector<1x512xi1>
    %55 = vector.broadcast %54 : vector<1x512xi1> to vector<32x512xi1>
    %56 = vector.broadcast %cst_20 : f32 to vector<32x512xf32>
    %57 = arith.select %55, %38, %56 : vector<32x512xi1>, vector<32x512xf32>
    %58 = arith.truncf %57 : vector<32x512xf32> to vector<32x512xbf16>
    %c32 = arith.constant 32 : index
    %c0_21 = arith.constant 0 : index
    %59 = vector.load %arg9[%c32, %c0_21] : memref<288x512xbf16, #tpu.memory_space<vmem>>, vector<32x512xbf16>
    tpu.vector_store %arg9[%c32, %c0_21], %58 {strides = array<i32>} : memref<288x512xbf16, #tpu.memory_space<vmem>>, vector<32x512xbf16>,
    %c15_i32_22 = arith.constant 15 : i32
    %60 = tpu.dynamic_rotate %8 by %c15_i32_22 dim 1 : vector<32x512xf32>, i32 -> vector<32x512xf32>
    %c-1_i32_23 = arith.constant -1 : i32
    %61 = vector.broadcast %c-1_i32_23 : i32 to vector<1x512xi32>
    %62 = arith.addi %13, %61 : vector<1x512xi32>
    %c1_i32 = arith.constant 1 : i32
    %63 = vector.broadcast %c1_i32 : i32 to vector<1x512xi32>
    %64 = arith.addi %15, %63 : vector<1x512xi32>
    %c0_i32_24 = arith.constant 0 : i32
    %65 = vector.broadcast %c0_i32_24 : i32 to vector<1x512xi32>
    %66 = arith.cmpi sge, %62, %65 : vector<1x512xi32>
    %c16_i32_25 = arith.constant 16 : i32
    %67 = vector.broadcast %c16_i32_25 : i32 to vector<1x512xi32>
    %68 = arith.cmpi slt, %62, %67 : vector<1x512xi32>
    %69 = arith.andi %66, %68 : vector<1x512xi1>
    %c0_i32_26 = arith.constant 0 : i32
    %70 = vector.broadcast %c0_i32_26 : i32 to vector<1x512xi32>
    %71 = arith.cmpi sge, %64, %70 : vector<1x512xi32>
    %72 = arith.andi %69, %71 : vector<1x512xi1>
    %c16_i32_27 = arith.constant 16 : i32
    %73 = vector.broadcast %c16_i32_27 : i32 to vector<1x512xi32>
    %74 = arith.cmpi slt, %64, %73 : vector<1x512xi32>
    %75 = arith.andi %72, %74 : vector<1x512xi1>
    %cst_28 = arith.constant 0.000000e+00 : f32
    %76 = vector.shape_cast %75 : vector<1x512xi1> to vector<1x512xi1>
    %77 = vector.broadcast %76 : vector<1x512xi1> to vector<32x512xi1>
    %78 = vector.broadcast %cst_28 : f32 to vector<32x512xf32>
    %79 = arith.select %77, %60, %78 : vector<32x512xi1>, vector<32x512xf32>
    %80 = arith.truncf %79 : vector<32x512xf32> to vector<32x512xbf16>
    %c64 = arith.constant 64 : index
    %c0_29 = arith.constant 0 : index
    %81 = vector.load %arg9[%c64, %c0_29] : memref<288x512xbf16, #tpu.memory_space<vmem>>, vector<32x512xbf16>
    tpu.vector_store %arg9[%c64, %c0_29], %80 {strides = array<i32>} : memref<288x512xbf16, #tpu.memory_space<vmem>>, vector<32x512xbf16>,
    %c1_i32_30 = arith.constant 1 : i32
    %82 = tpu.dynamic_rotate %8 by %c1_i32_30 dim 1 : vector<32x512xf32>, i32 -> vector<32x512xf32>
    %c0_i32_31 = arith.constant 0 : i32
    %83 = vector.broadcast %c0_i32_31 : i32 to vector<1x512xi32>
    %84 = arith.addi %13, %83 : vector<1x512xi32>
    %c-1_i32_32 = arith.constant -1 : i32
    %85 = vector.broadcast %c-1_i32_32 : i32 to vector<1x512xi32>
    %86 = arith.addi %15, %85 : vector<1x512xi32>
    %c0_i32_33 = arith.constant 0 : i32
    %87 = vector.broadcast %c0_i32_33 : i32 to vector<1x512xi32>
    %88 = arith.cmpi sge, %84, %87 : vector<1x512xi32>
    %c16_i32_34 = arith.constant 16 : i32
    %89 = vector.broadcast %c16_i32_34 : i32 to vector<1x512xi32>
    %90 = arith.cmpi slt, %84, %89 : vector<1x512xi32>
    %91 = arith.andi %88, %90 : vector<1x512xi1>
    %c0_i32_35 = arith.constant 0 : i32
    %92 = vector.broadcast %c0_i32_35 : i32 to vector<1x512xi32>
    %93 = arith.cmpi sge, %86, %92 : vector<1x512xi32>
    %94 = arith.andi %91, %93 : vector<1x512xi1>
    %c16_i32_36 = arith.constant 16 : i32
    %95 = vector.broadcast %c16_i32_36 : i32 to vector<1x512xi32>
    %96 = arith.cmpi slt, %86, %95 : vector<1x512xi32>
    %97 = arith.andi %94, %96 : vector<1x512xi1>
    %cst_37 = arith.constant 0.000000e+00 : f32
    %98 = vector.shape_cast %97 : vector<1x512xi1> to vector<1x512xi1>
    %99 = vector.broadcast %98 : vector<1x512xi1> to vector<32x512xi1>
    %100 = vector.broadcast %cst_37 : f32 to vector<32x512xf32>
    %101 = arith.select %99, %82, %100 : vector<32x512xi1>, vector<32x512xf32>
    %102 = arith.truncf %101 : vector<32x512xf32> to vector<32x512xbf16>
    %c96 = arith.constant 96 : index
    %c0_38 = arith.constant 0 : index
    %103 = vector.load %arg9[%c96, %c0_38] : memref<288x512xbf16, #tpu.memory_space<vmem>>, vector<32x512xbf16>
    tpu.vector_store %arg9[%c96, %c0_38], %102 {strides = array<i32>} : memref<288x512xbf16, #tpu.memory_space<vmem>>, vector<32x512xbf16>,
    %c0_i32_39 = arith.constant 0 : i32
    %104 = vector.broadcast %c0_i32_39 : i32 to vector<1x512xi32>
    %105 = arith.addi %13, %104 : vector<1x512xi32>
    %c0_i32_40 = arith.constant 0 : i32
    %106 = vector.broadcast %c0_i32_40 : i32 to vector<1x512xi32>
    %107 = arith.addi %15, %106 : vector<1x512xi32>
    %c0_i32_41 = arith.constant 0 : i32
    %108 = vector.broadcast %c0_i32_41 : i32 to vector<1x512xi32>
    %109 = arith.cmpi sge, %105, %108 : vector<1x512xi32>
    %c16_i32_42 = arith.constant 16 : i32
    %110 = vector.broadcast %c16_i32_42 : i32 to vector<1x512xi32>
    %111 = arith.cmpi slt, %105, %110 : vector<1x512xi32>
    %112 = arith.andi %109, %111 : vector<1x512xi1>
    %c0_i32_43 = arith.constant 0 : i32
    %113 = vector.broadcast %c0_i32_43 : i32 to vector<1x512xi32>
    %114 = arith.cmpi sge, %107, %113 : vector<1x512xi32>
    %115 = arith.andi %112, %114 : vector<1x512xi1>
    %c16_i32_44 = arith.constant 16 : i32
    %116 = vector.broadcast %c16_i32_44 : i32 to vector<1x512xi32>
    %117 = arith.cmpi slt, %107, %116 : vector<1x512xi32>
    %118 = arith.andi %115, %117 : vector<1x512xi1>
    %cst_45 = arith.constant 0.000000e+00 : f32
    %119 = vector.shape_cast %118 : vector<1x512xi1> to vector<1x512xi1>
    %120 = vector.broadcast %119 : vector<1x512xi1> to vector<32x512xi1>
    %121 = vector.broadcast %cst_45 : f32 to vector<32x512xf32>
    %122 = arith.select %120, %8, %121 : vector<32x512xi1>, vector<32x512xf32>
    %123 = arith.truncf %122 : vector<32x512xf32> to vector<32x512xbf16>
    %c128 = arith.constant 128 : index
    %c0_46 = arith.constant 0 : index
    %124 = vector.load %arg9[%c128, %c0_46] : memref<288x512xbf16, #tpu.memory_space<vmem>>, vector<32x512xbf16>
    tpu.vector_store %arg9[%c128, %c0_46], %123 {strides = array<i32>} : memref<288x512xbf16, #tpu.memory_space<vmem>>, vector<32x512xbf16>,
    %c511_i32 = arith.constant 511 : i32
    %125 = tpu.dynamic_rotate %8 by %c511_i32 dim 1 : vector<32x512xf32>, i32 -> vector<32x512xf32>
    %c0_i32_47 = arith.constant 0 : i32
    %126 = vector.broadcast %c0_i32_47 : i32 to vector<1x512xi32>
    %127 = arith.addi %13, %126 : vector<1x512xi32>
    %c1_i32_48 = arith.constant 1 : i32
    %128 = vector.broadcast %c1_i32_48 : i32 to vector<1x512xi32>
    %129 = arith.addi %15, %128 : vector<1x512xi32>
    %c0_i32_49 = arith.constant 0 : i32
    %130 = vector.broadcast %c0_i32_49 : i32 to vector<1x512xi32>
    %131 = arith.cmpi sge, %127, %130 : vector<1x512xi32>
    %c16_i32_50 = arith.constant 16 : i32
    %132 = vector.broadcast %c16_i32_50 : i32 to vector<1x512xi32>
    %133 = arith.cmpi slt, %127, %132 : vector<1x512xi32>
    %134 = arith.andi %131, %133 : vector<1x512xi1>
    %c0_i32_51 = arith.constant 0 : i32
    %135 = vector.broadcast %c0_i32_51 : i32 to vector<1x512xi32>
    %136 = arith.cmpi sge, %129, %135 : vector<1x512xi32>
    %137 = arith.andi %134, %136 : vector<1x512xi1>
    %c16_i32_52 = arith.constant 16 : i32
    %138 = vector.broadcast %c16_i32_52 : i32 to vector<1x512xi32>
    %139 = arith.cmpi slt, %129, %138 : vector<1x512xi32>
    %140 = arith.andi %137, %139 : vector<1x512xi1>
    %cst_53 = arith.constant 0.000000e+00 : f32
    %141 = vector.shape_cast %140 : vector<1x512xi1> to vector<1x512xi1>
    %142 = vector.broadcast %141 : vector<1x512xi1> to vector<32x512xi1>
    %143 = vector.broadcast %cst_53 : f32 to vector<32x512xf32>
    %144 = arith.select %142, %125, %143 : vector<32x512xi1>, vector<32x512xf32>
    %145 = arith.truncf %144 : vector<32x512xf32> to vector<32x512xbf16>
    %c160 = arith.constant 160 : index
    %c0_54 = arith.constant 0 : index
    %146 = vector.load %arg9[%c160, %c0_54] : memref<288x512xbf16, #tpu.memory_space<vmem>>, vector<32x512xbf16>
    tpu.vector_store %arg9[%c160, %c0_54], %145 {strides = array<i32>} : memref<288x512xbf16, #tpu.memory_space<vmem>>, vector<32x512xbf16>,
    %c497_i32 = arith.constant 497 : i32
    %147 = tpu.dynamic_rotate %8 by %c497_i32 dim 1 : vector<32x512xf32>, i32 -> vector<32x512xf32>
    %c1_i32_55 = arith.constant 1 : i32
    %148 = vector.broadcast %c1_i32_55 : i32 to vector<1x512xi32>
    %149 = arith.addi %13, %148 : vector<1x512xi32>
    %c-1_i32_56 = arith.constant -1 : i32
    %150 = vector.broadcast %c-1_i32_56 : i32 to vector<1x512xi32>
    %151 = arith.addi %15, %150 : vector<1x512xi32>
    %c0_i32_57 = arith.constant 0 : i32
    %152 = vector.broadcast %c0_i32_57 : i32 to vector<1x512xi32>
    %153 = arith.cmpi sge, %149, %152 : vector<1x512xi32>
    %c16_i32_58 = arith.constant 16 : i32
    %154 = vector.broadcast %c16_i32_58 : i32 to vector<1x512xi32>
    %155 = arith.cmpi slt, %149, %154 : vector<1x512xi32>
    %156 = arith.andi %153, %155 : vector<1x512xi1>
    %c0_i32_59 = arith.constant 0 : i32
    %157 = vector.broadcast %c0_i32_59 : i32 to vector<1x512xi32>
    %158 = arith.cmpi sge, %151, %157 : vector<1x512xi32>
    %159 = arith.andi %156, %158 : vector<1x512xi1>
    %c16_i32_60 = arith.constant 16 : i32
    %160 = vector.broadcast %c16_i32_60 : i32 to vector<1x512xi32>
    %161 = arith.cmpi slt, %151, %160 : vector<1x512xi32>
    %162 = arith.andi %159, %161 : vector<1x512xi1>
    %cst_61 = arith.constant 0.000000e+00 : f32
    %163 = vector.shape_cast %162 : vector<1x512xi1> to vector<1x512xi1>
    %164 = vector.broadcast %163 : vector<1x512xi1> to vector<32x512xi1>
    %165 = vector.broadcast %cst_61 : f32 to vector<32x512xf32>
    %166 = arith.select %164, %147, %165 : vector<32x512xi1>, vector<32x512xf32>
    %167 = arith.truncf %166 : vector<32x512xf32> to vector<32x512xbf16>
    %c192 = arith.constant 192 : index
    %c0_62 = arith.constant 0 : index
    %168 = vector.load %arg9[%c192, %c0_62] : memref<288x512xbf16, #tpu.memory_space<vmem>>, vector<32x512xbf16>
    tpu.vector_store %arg9[%c192, %c0_62], %167 {strides = array<i32>} : memref<288x512xbf16, #tpu.memory_space<vmem>>, vector<32x512xbf16>,
    %c496_i32 = arith.constant 496 : i32
    %169 = tpu.dynamic_rotate %8 by %c496_i32 dim 1 : vector<32x512xf32>, i32 -> vector<32x512xf32>
    %c1_i32_63 = arith.constant 1 : i32
    %170 = vector.broadcast %c1_i32_63 : i32 to vector<1x512xi32>
    %171 = arith.addi %13, %170 : vector<1x512xi32>
    %c0_i32_64 = arith.constant 0 : i32
    %172 = vector.broadcast %c0_i32_64 : i32 to vector<1x512xi32>
    %173 = arith.addi %15, %172 : vector<1x512xi32>
    %c0_i32_65 = arith.constant 0 : i32
    %174 = vector.broadcast %c0_i32_65 : i32 to vector<1x512xi32>
    %175 = arith.cmpi sge, %171, %174 : vector<1x512xi32>
    %c16_i32_66 = arith.constant 16 : i32
    %176 = vector.broadcast %c16_i32_66 : i32 to vector<1x512xi32>
    %177 = arith.cmpi slt, %171, %176 : vector<1x512xi32>
    %178 = arith.andi %175, %177 : vector<1x512xi1>
    %c0_i32_67 = arith.constant 0 : i32
    %179 = vector.broadcast %c0_i32_67 : i32 to vector<1x512xi32>
    %180 = arith.cmpi sge, %173, %179 : vector<1x512xi32>
    %181 = arith.andi %178, %180 : vector<1x512xi1>
    %c16_i32_68 = arith.constant 16 : i32
    %182 = vector.broadcast %c16_i32_68 : i32 to vector<1x512xi32>
    %183 = arith.cmpi slt, %173, %182 : vector<1x512xi32>
    %184 = arith.andi %181, %183 : vector<1x512xi1>
    %cst_69 = arith.constant 0.000000e+00 : f32
    %185 = vector.shape_cast %184 : vector<1x512xi1> to vector<1x512xi1>
    %186 = vector.broadcast %185 : vector<1x512xi1> to vector<32x512xi1>
    %187 = vector.broadcast %cst_69 : f32 to vector<32x512xf32>
    %188 = arith.select %186, %169, %187 : vector<32x512xi1>, vector<32x512xf32>
    %189 = arith.truncf %188 : vector<32x512xf32> to vector<32x512xbf16>
    %c224 = arith.constant 224 : index
    %c0_70 = arith.constant 0 : index
    %190 = vector.load %arg9[%c224, %c0_70] : memref<288x512xbf16, #tpu.memory_space<vmem>>, vector<32x512xbf16>
    tpu.vector_store %arg9[%c224, %c0_70], %189 {strides = array<i32>} : memref<288x512xbf16, #tpu.memory_space<vmem>>, vector<32x512xbf16>,
    %c495_i32 = arith.constant 495 : i32
    %191 = tpu.dynamic_rotate %8 by %c495_i32 dim 1 : vector<32x512xf32>, i32 -> vector<32x512xf32>
    %c1_i32_71 = arith.constant 1 : i32
    %192 = vector.broadcast %c1_i32_71 : i32 to vector<1x512xi32>
    %193 = arith.addi %13, %192 : vector<1x512xi32>
    %c1_i32_72 = arith.constant 1 : i32
    %194 = vector.broadcast %c1_i32_72 : i32 to vector<1x512xi32>
    %195 = arith.addi %15, %194 : vector<1x512xi32>
    %c0_i32_73 = arith.constant 0 : i32
    %196 = vector.broadcast %c0_i32_73 : i32 to vector<1x512xi32>
    %197 = arith.cmpi sge, %193, %196 : vector<1x512xi32>
    %c16_i32_74 = arith.constant 16 : i32
    %198 = vector.broadcast %c16_i32_74 : i32 to vector<1x512xi32>
    %199 = arith.cmpi slt, %193, %198 : vector<1x512xi32>
    %200 = arith.andi %197, %199 : vector<1x512xi1>
    %c0_i32_75 = arith.constant 0 : i32
    %201 = vector.broadcast %c0_i32_75 : i32 to vector<1x512xi32>
    %202 = arith.cmpi sge, %195, %201 : vector<1x512xi32>
    %203 = arith.andi %200, %202 : vector<1x512xi1>
    %c16_i32_76 = arith.constant 16 : i32
    %204 = vector.broadcast %c16_i32_76 : i32 to vector<1x512xi32>
    %205 = arith.cmpi slt, %195, %204 : vector<1x512xi32>
    %206 = arith.andi %203, %205 : vector<1x512xi1>
    %cst_77 = arith.constant 0.000000e+00 : f32
    %207 = vector.shape_cast %206 : vector<1x512xi1> to vector<1x512xi1>
    %208 = vector.broadcast %207 : vector<1x512xi1> to vector<32x512xi1>
    %209 = vector.broadcast %cst_77 : f32 to vector<32x512xf32>
    %210 = arith.select %208, %191, %209 : vector<32x512xi1>, vector<32x512xf32>
    %211 = arith.truncf %210 : vector<32x512xf32> to vector<32x512xbf16>
    %c256 = arith.constant 256 : index
    %c0_78 = arith.constant 0 : index
    %212 = vector.load %arg9[%c256, %c0_78] : memref<288x512xbf16, #tpu.memory_space<vmem>>, vector<32x512xbf16>
    tpu.vector_store %arg9[%c256, %c0_78], %211 {strides = array<i32>} : memref<288x512xbf16, #tpu.memory_space<vmem>>, vector<32x512xbf16>,
    %c0_79 = arith.constant 0 : index
    %c0_80 = arith.constant 0 : index
    %213 = vector.load %arg4[%c0_79, %c0_80] : memref<64x288xbf16, #tpu.memory_space<vmem>>, vector<64x288xbf16>
    %c0_81 = arith.constant 0 : index
    %c0_82 = arith.constant 0 : index
    %214 = vector.load %arg9[%c0_81, %c0_82] : memref<288x512xbf16, #tpu.memory_space<vmem>>, vector<288x512xbf16>
    %cst_83 = arith.constant dense<0.000000e+00> : vector<64x512xf32>
    %215 = tpu.matmul %213, %214, %cst_83 {dimension_numbers = #tpu.dot_dimension_numbers<[1], [0], [0], [1], [0, 0, 1, 1], [], []>} : vector<64x288xbf16>, vector<288x512xbf16>, vector<64x512xf32> -> vector<64x512xf32>
    %c0_84 = arith.constant 0 : index
    %c0_85 = arith.constant 0 : index
    %216 = vector.load %arg5[%c0_84, %c0_85] : memref<64x1xf32, #tpu.memory_space<vmem>>, vector<64x1xf32>
    %217 = vector.broadcast %216 : vector<64x1xf32> to vector<64x512xf32>
    %218 = arith.addf %215, %217 : vector<64x512xf32>
    %cst_86 = arith.constant 0.000000e+00 : f32
    %219 = vector.broadcast %cst_86 : f32 to vector<64x512xf32>
    %220 = arith.maximumf %218, %219 : vector<64x512xf32>
    %c0_87 = arith.constant 0 : index
    %c0_88 = arith.constant 0 : index
    %221 = vector.load %arg6[%c0_87, %c0_88] : memref<1x64xbf16, #tpu.memory_space<vmem>>, vector<1x64xbf16>
    %222 = arith.truncf %220 : vector<64x512xf32> to vector<64x512xbf16>
    %cst_89 = arith.constant dense<0.000000e+00> : vector<1x512xf32>
    %223 = tpu.matmul %221, %222, %cst_89 {dimension_numbers = #tpu.dot_dimension_numbers<[1], [0], [0], [1], [0, 0, 1, 1], [], []>} : vector<1x64xbf16>, vector<64x512xbf16>, vector<1x512xf32> -> vector<1x512xf32>
    %c0_90 = arith.constant 0 : index
    %c0_91 = arith.constant 0 : index
    %224 = vector.load %arg7[%c0_90, %c0_91] : memref<1x1xf32, #tpu.memory_space<vmem>>, vector<1x1xf32>
    %225 = vector.broadcast %224 : vector<1x1xf32> to vector<1x512xf32>
    %226 = arith.addf %223, %225 : vector<1x512xf32>
    %227 = arith.negf %226 : vector<1x512xf32>
    %228 = math.exp %227 : vector<1x512xf32>
    %cst_92 = arith.constant 1.000000e+00 : f32
    %229 = vector.broadcast %cst_92 : f32 to vector<1x512xf32>
    %230 = arith.addf %229, %228 : vector<1x512xf32>
    %231 = arith.divf %229, %230 : vector<1x512xf32>
    %c0_93 = arith.constant 0 : index
    %c0_94 = arith.constant 0 : index
    %c0_95 = arith.constant 0 : index
    %232 = vector.load %arg8[%c0_93, %c0_94, %c0_95] : memref<1x1x512xf32, #tpu.memory_space<vmem>>, vector<1x1x512xf32>
    %233 = vector.shape_cast %232 : vector<1x1x512xf32> to vector<1x512xf32>
    %234 = vector.shape_cast %231 : vector<1x512xf32> to vector<1x1x512xf32>
    tpu.vector_store %arg8[%c0_93, %c0_94, %c0_95], %234 {strides = array<i32>} : memref<1x1x512xf32, #tpu.memory_space<vmem>>, vector<1x1x512xf32>,
    return
  }
  func.func @transform_0(%arg0: i32) -> (i32, i32, i32) {
    %c0_i32 = arith.constant 0 : i32
    %c0_i32_0 = arith.constant 0 : i32
    %c0_i32_1 = arith.constant 0 : i32
    return %arg0, %c0_i32, %c0_i32_0 : i32, i32, i32
  }
  func.func @transform_1(%arg0: i32) -> (i32, i32) {
    %c0_i32 = arith.constant 0 : i32
    %c0_i32_0 = arith.constant 0 : i32
    %c0_i32_1 = arith.constant 0 : i32
    return %c0_i32, %c0_i32_0 : i32, i32
  }
  func.func @transform_2(%arg0: i32) -> (i32, i32) {
    %c0_i32 = arith.constant 0 : i32
    %c0_i32_0 = arith.constant 0 : i32
    %c0_i32_1 = arith.constant 0 : i32
    return %c0_i32, %c0_i32_0 : i32, i32
  }
  func.func @transform_3(%arg0: i32) -> (i32, i32) {
    %c0_i32 = arith.constant 0 : i32
    %c0_i32_0 = arith.constant 0 : i32
    %c0_i32_1 = arith.constant 0 : i32
    return %c0_i32, %c0_i32_0 : i32, i32
  }
  func.func @transform_4(%arg0: i32) -> (i32, i32) {
    %c0_i32 = arith.constant 0 : i32
    %c0_i32_0 = arith.constant 0 : i32
    %c0_i32_1 = arith.constant 0 : i32
    return %c0_i32, %c0_i32_0 : i32, i32
  }
  func.func @transform_5(%arg0: i32) -> (i32, i32) {
    %c0_i32 = arith.constant 0 : i32
    %c0_i32_0 = arith.constant 0 : i32
    %c0_i32_1 = arith.constant 0 : i32
    return %c0_i32, %c0_i32_0 : i32, i32
  }
  func.func @transform_6(%arg0: i32) -> (i32, i32) {
    %c0_i32 = arith.constant 0 : i32
    %c0_i32_0 = arith.constant 0 : i32
    %c0_i32_1 = arith.constant 0 : i32
    return %c0_i32, %c0_i32_0 : i32, i32
  }
  func.func @transform_7(%arg0: i32) -> (i32, i32, i32) {
    %c0_i32 = arith.constant 0 : i32
    %c0_i32_0 = arith.constant 0 : i32
    %c0_i32_1 = arith.constant 0 : i32
    return %arg0, %c0_i32, %c0_i32_0 : i32, i32, i32
  }
}

</mosaic_0001>

<bundles_post_ra>
// kernel: tpu_custom_call.1
= control target key start
LH: loop header
LB: loop body
LE: loop exit
PB: predicated region body
PF: predicated region fallthrough
CT: control target
= control target key end

     0   :  { %s4518_s0 = inlined_call_operand.hbm [shape: bf16[1,36,512], index: 0, kind: input, shape index: {}]   ;;  %s4519_s1 = inlined_call_operand.vmem [shape: bf16[32,36], index: 1, kind: input, shape index: {}]   ;;  %s4520_s2 = inlined_call_operand.vmem [shape: f32[32,1], index: 2, kind: input, shape index: {}]   ;;  %s4521_s3 = inlined_call_operand.vmem [shape: bf16[64,288], index: 3, kind: input, shape index: {}]   ;;  %s4522_s4 = inlined_call_operand.vmem [shape: f32[64,1], index: 4, kind: input, shape index: {}]   ;;  %s4523_s5 = inlined_call_operand.vmem [shape: bf16[1,64], index: 5, kind: input, shape index: {}]   ;;  %s4524_s6 = inlined_call_operand.<no memory space> [shape: f32[1,1], index: 6, kind: input, shape index: {}]   ;;  %s4525_s7 = inlined_call_operand.hbm [shape: f32[1,1,512], index: 7, kind: output, shape index: {}]  }
   0x1   :  { %v12_v0 = vstv %s4524_s6 }
   0x2   :  { %13 = vst [vmem:[#allocation3] sm:$0x1] %v12_v0 }
   0x3   :  { %14 = vsyncpa [#allocation5], 0 }
   0x4   :  { %15 = vsyncpa [#allocation6], 0  ;;  %s2679_s26 = smov [#allocation4]   ;;  %s2631_s30 = scalar_lea.hbm %s4518_s0, 1280 }
   0x5   :  { %s21_s27 = sshll.u32 %s2679_s26, 4  ;;  %p2632_p0 = scmp.ne.s32.totalorder %s4518_s0, %s2631_s30  ;;  %s22_s27 = int_to_ptr.vmem [resolvable:$true] %s21_s27 }
   0x6   :  { %p2635_p1 = scmp.lt.u32.totalorder %s2631_s30, %s4518_s0 }
   0x8   :  { %p2637_p2 = pnand %p2635_p1, %p2632_p0 }
   0xa   :  { %2640 = shalt.err (!%p2637_p2)
}
   0xb   :  { %s2641_s6 = scalar_lea.vmem %s22_s27, 1280  ;;  %p2646_p4 = scmp.lt.s32.totalorder %s22_s27, %s22_s27 }
   0xc   :  { %p2642_p3 = scmp.ne.s32.totalorder %s22_s27, %s2641_s6  ;;  %p2647_p5 = scmp.lt.s32.totalorder %s2641_s6, %s2641_s6 }
   0xe   :  { %p2648_p6 = por %p2647_p5, %p2646_p4 }
  0x10   :  { %p2649_p7 = pnand %p2648_p6, %p2642_p3 }
  0x12   :  { %2652 = shalt.err (!%p2649_p7)
}
  0x13   :  { %s2680_s12 = smov 256   ;;  %s2681_s13 = smov 16  }
  0x14   :  { %27 = dma.hbm_to_vmem [thread:$0]  %s4518_s0, 1280, %s22_s27, [#allocation5], %s2680_s12, %s2680_s12, %s2681_s13  }
  0x15   :  { %2675 = dma.done.wait [#allocation5], 1280  }
  0x16   :  { %2676 = vsyncadd [#allocation5], 4294966016  ;;  %v4541_v1 = vmov 0   ;;  %v2581_v2 = vld [vmem:[#allocation4 + $0x4] ss:$16 sps:$4 sm:$0xff]   ;;  %vm149_vm0 = vcmask 1041408  }
  0x17   :  { %194 = vmatprep.mubr.bf16.mxu0 %v4541_v1  ;;  %247 = vmatprep.mubr.bf16.mxu1 %v4541_v1  ;;  %v2583_v3 = vld [vmem:[#allocation4 + $0xc] ss:$16 sps:$4 sm:$0xff]   ;;  %v2585_v4 = vld [vmem:[#allocation4] ss:$16 sps:$4 sm:$0xff]   ;;  %v2586_v5 = vld [vmem:[#allocation4 + $0x8] ss:$16 sps:$4 sm:$0xff]  }
  0x18   :  { %2259 = vset.pattern.permute.xlu0 %v4541_v1  ;;  %2260 = vset.pattern.permute.xlu1 %v4541_v1  ;;  %v2587_v6 = vld [vmem:[#allocation4 + $0x24] ss:$16 sps:$4 sm:$0xff]   ;;  %v2589_v7 = vld [vmem:[#allocation4 + $0x2c] ss:$16 sps:$4 sm:$0xff]   ;;  %v2591_v8 = vld [vmem:[#allocation4 + $0x20] ss:$16 sps:$4 sm:$0xff]  }
  0x19   :  { %162 = vmatprep.subr.bf16.mxu0 %v2581_v2  ;;  %215 = vmatprep.subr.bf16.mxu1 %v2583_v3  ;;  %v2592_v9 = vld [vmem:[#allocation4 + $0x28] ss:$16 sps:$4 sm:$0xff]   ;;  %v56_v10 = vld [vmem:[#allocation4 + $0x40] sm:$0x33]  ;;  %v60_v17 = vld [vmem:[%s4520_s2 + $0x10] sm:$0xff]  ;;  %vm142_vm1 = vcmask 293888  }
  0x1a   :  { %163 = vmatpush1.bf16.msra.mxu0 %v2585_v4  ;;  %216 = vmatpush1.bf16.msra.mxu1 %v2586_v5  ;;  %v57_v11 = vld [vmem:[#allocation4 + $0x48] sm:$0x33]  ;;  %v1931_v12 = vcombine.high %v56_v10, %v56_v10  ;;  %v1930_v14 = vcombine.low %v56_v10, %v56_v10  ;;  %v58_v16 = vld [vmem:[%s4520_s2] sm:$0xff]  ;;  %v61_v22 = vld [vmem:[%s4520_s2 + $0x18] sm:$0xff]  ;;  %s2685_s27 = smov 1   ;;  %s2686_s28 = smov 127  }
  0x1b   :  { %164 = vmatprep.subr.bf16.mxu0 %v2587_v6  ;;  %217 = vmatprep.subr.bf16.mxu1 %v2589_v7  ;;  %v1933_v13 = vcombine.high %v57_v11, %v57_v11  ;;  %v1932_v15 = vcombine.low %v57_v11, %v57_v11  ;;  %v2597_v20 = vld [vmem:[%s4519_s1] sm:$0xff]   ;;  %v59_v21 = vld [vmem:[%s4520_s2 + $0x8] sm:$0xff]  ;;  %s2684_s2 = smov 15   ;;  %s2687_s29 = smov 113  }
  0x1c   :  { %v151_v18 = vsel %vm149_vm0, %v1930_v14, 0  ;;  %64 = vperm.xlu0 %2259, %v58_v16   ;;  %74 = vperm.xlu1 %2260, %v60_v17   ;;  %v2598_v23 = vld [vmem:[%s4519_s1 + $0x8] sm:$0xff]   ;;  %s2683_s1 = smov 17   ;;  %s2688_s30 = smov 112  }
  0x1d   :  { %v157_v19 = vsel %vm149_vm0, %v1932_v15, 0  ;;  %s2689_s10 = smov 111  }
  0x1e   :  { %165 = vmatpush1.bf16.msra.mxu0 %v2591_v8  ;;  %218 = vmatpush1.bf16.msra.mxu1 %v2592_v9 }
  0x1f   :  { %1934 = vmatprep.subr.msk.bf16.mxu0 %vm149_vm0, %v1931_v12  ;;  %1937 = vmatprep.subr.msk.bf16.mxu1 %vm149_vm0, %v1933_v13 }
  0x20   :  { %69 = vperm.xlu0 %2259, %v59_v21   ;;  %79 = vperm.xlu1 %2260, %v61_v22  }
  0x22   :  { %167 = vmatpush1.bf16.msra.mxu0 %v151_v18  ;;  %220 = vmatpush1.bf16.msra.mxu1 %v157_v19 }
  0x25   :  { %1935 = vmatmul.mubr.msk.bf16.vlgmr.msra.gmra.mrb[0].mxu0 %vm142_vm1, %v2597_v20  ;;  %1938 = vmatmul.mubr.msk.bf16.vlgmr.msra.gmra.mrb[0].mxu1 %vm142_vm1, %v2597_v20 }
  0x26   :  { %204 = vmatprep.mubr.bf16.mxu0 %v4541_v1  ;;  %257 = vmatprep.mubr.bf16.mxu1 %v4541_v1 }
  0x2d   :  { %1936 = vmatmul.mubr.msk.bf16.gmra.mrb[4].mxu0 %vm142_vm1, %v2598_v23  ;;  %1939 = vmatmul.mubr.msk.bf16.gmra.mrb[4].mxu1 %vm142_vm1, %v2598_v23 }
  0x9b   :  { %v65_v24 = vpop.permute.xlu0 %64  ;;  %v75_v26 = vpop.permute.xlu1 %74 }
  0x9f   :  { %v70_v25 = vpop.permute.xlu0 %69  ;;  %v80_v53 = vpop.permute.xlu1 %79 }
  0xf8   :  { %v196_v27 = vpop.f32.mrb[0].mxu0  ;;  %v249_v28 = vpop.f32.mrb[0].mxu1 }
  0xf9   :  { %v2776_v29 = vadd.f32 %v196_v27, %v65_v24  ;;  %v2778_v30 = vadd.f32 %v249_v28, %v65_v24  ;;  %v198_v31 = vpop.f32.mrb[1].mxu0  ;;  %v251_v32 = vpop.f32.mrb[1].mxu1 }
  0xfa   :  { %v2780_v33 = vadd.f32 %v198_v31, %v65_v24  ;;  %v2782_v34 = vadd.f32 %v251_v32, %v65_v24  ;;  %v200_v35 = vpop.f32.mrb[2].mxu0  ;;  %v253_v36 = vpop.f32.mrb[2].mxu1 }
  0xfb   :  { %v2784_v37 = vadd.f32 %v200_v35, %v70_v25  ;;  %v2786_v38 = vadd.f32 %v253_v36, %v70_v25  ;;  %v202_v39 = vpop.f32.mrb[3].mxu0  ;;  %v255_v40 = vpop.f32.mrb[3].mxu1  ;;  %v268_v43 = vmax.f32 %v2776_v29, 0.0  ;;  %v270_v44 = vmax.f32 %v2778_v30, 0.0 }
  0xfc   :  { %v203_v41 = vadd.f32 %v202_v39, %v70_v25  ;;  %v256_v42 = vadd.f32 %v255_v40, %v70_v25  ;;  %v269_v47 = vmax.f32 %v2780_v33, 0.0  ;;  %v271_v48 = vmax.f32 %v2782_v34, 0.0 }
  0xfd   :  { %v272_v45 = vmax.f32 %v2784_v37, 0.0  ;;  %v274_v46 = vmax.f32 %v2786_v38, 0.0  ;;  %v4539_v29 = vlaneseq }
  0xfe   :  { %v273_v49 = vmax.f32 %v203_v41, 0.0  ;;  %v275_v50 = vmax.f32 %v256_v42, 0.0 }
  0xff   :  { %v2794_v51 = vpack.i.bf16 %v272_v45, %v268_v43  ;;  %v2796_v52 = vpack.i.bf16 %v274_v46, %v270_v44  ;;  %v2842_v23 = vpack.c.bf16 %v272_v45, %v268_v43  ;;  %v2848_v25 = vpack.c.bf16 %v274_v46, %v270_v44 }
 0x100   :  { %v2798_v54 = vpack.i.bf16 %v273_v49, %v269_v47  ;;  %v2800_v55 = vpack.i.bf16 %v275_v50, %v271_v48  ;;  %v206_v56 = vpop.f32.mrb[4].mxu0  ;;  %v259_v57 = vpop.f32.mrb[4].mxu1  ;;  %v2834_v21 = vpack.c.bf16 %v273_v49, %v269_v47  ;;  %v2840_v22 = vpack.c.bf16 %v275_v50, %v271_v48  ;;  %v2601_v49 = vld [vmem:[%s4521_s3 + $0x4] ss:$12 sps:$4 sm:$0xff]  }
 0x101   :  { %2262 = vrot.lane.b32.xlu0 %v2794_v51, %s2683_s1  ;;  %v208_v58 = vpop.f32.mrb[5].mxu0  ;;  %v261_v59 = vpop.f32.mrb[5].mxu1  ;;  %v207_v62 = vadd.f32 %v206_v56, %v75_v26  ;;  %v260_v63 = vadd.f32 %v259_v57, %v75_v26  ;;  %4572 = vst [vmem:[#allocation12_spill] sm:$0xff] %v2842_v23  ;;  %4574 = vst [vmem:[#allocation14_spill] sm:$0xff] %v2848_v25  ;;  %v2909_v30 = vand.u32 127, %v4539_v29  ;;  %1442 = vmatprep.mubr.bf16.mxu0 %v2601_v49 }
 0x102   :  { %2322 = vrot.lane.b32.xlu1 %v2798_v54, %s2683_s1  ;;  %v210_v60 = vpop.f32.mrb[6].mxu0  ;;  %v263_v61 = vpop.f32.mrb[6].mxu1  ;;  %v209_v3 = vadd.f32 %v208_v58, %v75_v26  ;;  %v262_v4 = vadd.f32 %v261_v59, %v75_v26  ;;  %4570 = vst [vmem:[#allocation10_spill] sm:$0xff] %v2834_v21  ;;  %4571 = vst [vmem:[#allocation11_spill] sm:$0xff] %v2840_v22  ;;  %1588 = vmatprep.mubr.bf16.mxu1 %v2601_v49  ;;  %v1291_v49 = vld [vmem:[%s4522_s4 + $0x10] sm:$0xff] }
 0x103   :  { %v212_v0 = vpop.f32.mrb[7].mxu0  ;;  %v265_v2 = vpop.f32.mrb[7].mxu1  ;;  %v276_v5 = vmax.f32 %v207_v62, 0.0  ;;  %v278_v6 = vmax.f32 %v260_v63, 0.0  ;;  %v211_v7 = vadd.f32 %v210_v60, %v80_v53  ;;  %v264_v8 = vadd.f32 %v263_v61, %v80_v53 }
 0x104   :  { %v277_v9 = vmax.f32 %v209_v3, 0.0  ;;  %v279_v10 = vmax.f32 %v262_v4, 0.0  ;;  %v213_v11 = vadd.f32 %v212_v0, %v80_v53  ;;  %v266_v12 = vadd.f32 %v265_v2, %v80_v53 }
 0x105   :  { %2267 = vrot.lane.b32.xlu0 %v2796_v52, %s2683_s1  ;;  %v280_v13 = vmax.f32 %v211_v7, 0.0  ;;  %v282_v14 = vmax.f32 %v264_v8, 0.0  ;;  %v286_v31 = vadd.s32 128, %v2909_v30  ;;  %v288_v34 = vadd.s32 384, %v2909_v30 }
 0x106   :  { %2327 = vrot.lane.b32.xlu1 %v2800_v55, %s2683_s1  ;;  %v281_v15 = vmax.f32 %v213_v11, 0.0  ;;  %v283_v16 = vmax.f32 %v266_v12, 0.0  ;;  %v287_v36 = vadd.s32 256, %v2909_v30  ;;  %v289_v41 = vand.u32 255, %v2909_v30 }
 0x107   :  { %v2812_v17 = vpack.i.bf16 %v280_v13, %v276_v5  ;;  %v2814_v18 = vpack.i.bf16 %v282_v14, %v278_v6  ;;  %v2852_v27 = vpack.c.bf16 %v280_v13, %v276_v5  ;;  %v2856_v28 = vpack.c.bf16 %v282_v14, %v278_v6 }
 0x108   :  { %v2818_v19 = vpack.i.bf16 %v281_v15, %v277_v9  ;;  %v2820_v20 = vpack.i.bf16 %v283_v16, %v279_v10  ;;  %v2844_v24 = vpack.c.bf16 %v281_v15, %v277_v9  ;;  %v2850_v26 = vpack.c.bf16 %v283_v16, %v279_v10 }
 0x109   :  { %2272 = vrot.lane.b32.xlu0 %v2794_v51, %s2681_s13  ;;  %4576 = vst [vmem:[#allocation16_spill] sm:$0xff] %v2852_v27  ;;  %4577 = vst [vmem:[#allocation17_spill] sm:$0xff] %v2856_v28  ;;  %v290_v32 = vand.u32 255, %v286_v31  ;;  %v292_v38 = vand.u32 255, %v288_v34  ;;  %v291_v40 = vand.u32 255, %v287_v36  ;;  %v2956_v45 = vshra.s32 %v289_v41, 4 }
 0x10a   :  { %2332 = vrot.lane.b32.xlu1 %v2798_v54, %s2681_s13  ;;  %4573 = vst [vmem:[#allocation13_spill] sm:$0xff] %v2844_v24  ;;  %4575 = vst [vmem:[#allocation15_spill] sm:$0xff] %v2850_v26  ;;  %v2973_v50 = vand.u32 15, %v289_v41  ;;  %v4582_v61 = vmov 0  ;;  %v1289_v41 = vld [vmem:[%s4522_s4] sm:$0xff] }
 0x10b   :  { %v2924_v33 = vshra.s32 %v290_v32, 4  ;;  %v2929_v35 = vand.u32 15, %v290_v32  ;;  %v2945_v42 = vshra.s32 %v292_v38, 4  ;;  %v2952_v44 = vshra.s32 %v291_v40, 4 }
 0x10c   :  { %v2960_v46 = vand.u32 15, %v292_v38  ;;  %v2968_v48 = vand.u32 15, %v291_v40  ;;  %v350_v56 = vadd.s32 4294967295, %v2956_v45  ;;  %v2994_v60 = vadd.s32 4294967295, %v2973_v50 }
 0x10d   :  { %2277 = vrot.lane.b32.xlu0 %v2796_v52, %s2681_s13  ;;  %v351_v37 = vadd.s32 4294967295, %v2924_v33  ;;  %v2938_v39 = vadd.s32 4294967295, %v2929_v35  ;;  %v353_v47 = vadd.s32 4294967295, %v2945_v42  ;;  %v352_v53 = vadd.s32 4294967295, %v2952_v44 }
 0x10e   :  { %2337 = vrot.lane.b32.xlu1 %v2800_v55, %s2681_s13  ;;  %v2988_v58 = vadd.s32 4294967295, %v2960_v46  ;;  %v2991_v59 = vadd.s32 4294967295, %v2968_v48  ;;  %vm358_vm14 = vcmp.ge.s32.totalorder %v350_v56, 0  ;;  %vm362_vm15 = vcmp.lt.s32.totalorder %v350_v56, 16  ;;  %v1292_v56 = vld [vmem:[%s4522_s4 + $0x18] sm:$0xff] }
 0x10f   :  { %vm359_vm2 = vcmp.ge.s32.totalorder %v351_v37, 0  ;;  %vm363_vm3 = vcmp.lt.s32.totalorder %v351_v37, 16  ;;  %vm4532_vm5 = vcmp.ge.s32.totalorder %v2938_v39, 0  ;;  %vm4526_vm7 = vcmp.lt.s32.totalorder %v2938_v39, 16 }
 0x110   :  { %vm2947_vm4 = vmand %vm359_vm2, %vm363_vm3  ;;  %vm361_vm9 = vcmp.ge.s32.totalorder %v353_v47, 0  ;;  %vm365_vm10 = vcmp.lt.s32.totalorder %v353_v47, 16  ;;  %vm360_vm11 = vcmp.ge.s32.totalorder %v352_v53, 0  ;;  %vm364_vm12 = vcmp.lt.s32.totalorder %v352_v53, 16 }
 0x111   :  { %2282 = vrot.lane.b32.xlu0 %v2794_v51, %s2684_s2  ;;  %vm375_vm6 = vmand %vm2947_vm4, %vm4532_vm5  ;;  %vm4531_vm1 = vcmp.ge.s32.totalorder %v2988_v58, 0  ;;  %vm4527_vm3 = vcmp.ge.s32.totalorder %v2991_v59, 0 }
 0x112   :  { %2342 = vrot.lane.b32.xlu1 %v2798_v54, %s2684_s2  ;;  %vm2983_vm8 = vmand %vm375_vm6, %vm4526_vm7  ;;  %vm4537_vm6 = vcmp.lt.s32.totalorder %v2909_v30, 17 }
 0x113   :  { %vm4536_vm13 = vmpackc.low %vm2983_vm8, %vm2983_vm8 }
 0x114   :  { %vm3003_vm0 = vmand %vm361_vm9, %vm365_vm10  ;;  %vm4528_vm9 = vcmp.ge.s32.totalorder %v2994_v60, 0 }
 0x115   :  { %2287 = vrot.lane.b32.xlu0 %v2796_v52, %s2684_s2  ;;  %v4583_v61 = vsel %vm3003_vm0, 4294967295, %v4582_v61  ;;  %vm3008_vm2 = vmand %vm360_vm11, %vm364_vm12  ;;  %vm4530_vm11 = vcmp.lt.s32.totalorder %v2988_v58, 16 }
 0x116   :  { %2347 = vrot.lane.b32.xlu1 %v2800_v55, %s2684_s2  ;;  %vm3014_vm7 = vmand %vm358_vm14, %vm362_vm15  ;;  %vm4529_vm14 = vcmp.lt.s32.totalorder %v2991_v59, 16 }
 0x117   :  { %vm377_vm10 = vmand %vm3003_vm0, %vm4531_vm1 }
 0x118   :  { %vm376_vm12 = vmand %vm3008_vm2, %vm4527_vm3 }
 0x119   :  { %2292 = vrot.lane.b32.xlu0 %v2794_v51, %s2685_s27  ;;  %vm3041_vm15 = vmand %vm3014_vm7, %vm4528_vm9 }
 0x11a   :  { %2352 = vrot.lane.b32.xlu1 %v2798_v54, %s2685_s27  ;;  %vm3047_vm3 = vmand %vm377_vm10, %vm4530_vm11  ;;  %vm4538_vm11 = vcmp.lt.s32.totalorder %v2909_v30, 16 }
 0x11b   :  { %vm3055_vm9 = vmand %vm376_vm12, %vm4529_vm14 }
 0x11c   :  { %vm4534_vm10 = vmpackc.low %vm3041_vm15, %vm3041_vm15 }
 0x11d   :  { %2297 = vrot.lane.b32.xlu0 %v2796_v52, %s2685_s27  ;;  %vm4535_vm12 = vmpackc.low %vm3047_vm3, %vm3047_vm3 }
 0x11e   :  { %2357 = vrot.lane.b32.xlu1 %v2800_v55, %s2685_s27  ;;  %vm4533_vm14 = vmpackc.low %vm3055_vm9, %vm3055_vm9 }
 0x121   :  { %2302 = vrot.lane.b32.xlu0 %v2794_v51, %s2686_s28 }
 0x122   :  { %2362 = vrot.lane.b32.xlu1 %v2798_v54, %s2686_s28 }
 0x125   :  { %2307 = vrot.lane.b32.xlu0 %v2796_v52, %s2686_s28 }
 0x126   :  { %2367 = vrot.lane.b32.xlu1 %v2800_v55, %s2686_s28 }
 0x129   :  { %2312 = vrot.lane.b32.xlu0 %v2794_v51, %s2687_s29 }
 0x12a   :  { %2372 = vrot.lane.b32.xlu1 %v2798_v54, %s2687_s29 }
 0x12d   :  { %2317 = vrot.lane.b32.xlu0 %v2796_v52, %s2687_s29 }
 0x12e   :  { %2377 = vrot.lane.b32.xlu1 %v2800_v55, %s2687_s29 }
 0x131   :  { %2382 = vrot.lane.b32.xlu0 %v2812_v17, %s2683_s1 }
 0x132   :  { %2447 = vrot.lane.b32.xlu1 %v2818_v19, %s2683_s1 }
 0x135   :  { %2387 = vrot.lane.b32.xlu0 %v2814_v18, %s2683_s1 }
 0x136   :  { %2452 = vrot.lane.b32.xlu1 %v2820_v20, %s2683_s1 }
 0x139   :  { %2392 = vrot.lane.b32.xlu0 %v2812_v17, %s2681_s13 }
 0x13a   :  { %2457 = vrot.lane.b32.xlu1 %v2818_v19, %s2681_s13 }
 0x13d   :  { %2397 = vrot.lane.b32.xlu0 %v2814_v18, %s2681_s13 }
 0x13e   :  { %2462 = vrot.lane.b32.xlu1 %v2820_v20, %s2681_s13 }
 0x141   :  { %2402 = vrot.lane.b32.xlu0 %v2812_v17, %s2684_s2 }
 0x142   :  { %2467 = vrot.lane.b32.xlu1 %v2818_v19, %s2684_s2 }
 0x145   :  { %2407 = vrot.lane.b32.xlu0 %v2814_v18, %s2684_s2 }
 0x146   :  { %2472 = vrot.lane.b32.xlu1 %v2820_v20, %s2684_s2 }
 0x149   :  { %2412 = vrot.lane.b32.xlu0 %v2812_v17, %s2685_s27 }
 0x14a   :  { %2477 = vrot.lane.b32.xlu1 %v2818_v19, %s2685_s27 }
 0x14d   :  { %2417 = vrot.lane.b32.xlu0 %v2814_v18, %s2685_s27 }
 0x14e   :  { %2482 = vrot.lane.b32.xlu1 %v2820_v20, %s2685_s27 }
 0x151   :  { %2422 = vrot.lane.b32.xlu0 %v2794_v51, %s2688_s30 }
 0x152   :  { %2487 = vrot.lane.b32.xlu1 %v2798_v54, %s2688_s30 }
 0x155   :  { %2427 = vrot.lane.b32.xlu0 %v2812_v17, %s2686_s28 }
 0x156   :  { %2497 = vrot.lane.b32.xlu1 %v2800_v55, %s2688_s30 }
 0x159   :  { %2432 = vrot.lane.b32.xlu0 %v2814_v18, %s2686_s28 }
 0x15a   :  { %2512 = vrot.lane.b32.xlu1 %v2818_v19, %s2686_s28 }
 0x15d   :  { %2437 = vrot.lane.b32.xlu0 %v2812_v17, %s2687_s29 }
 0x15e   :  { %2517 = vrot.lane.b32.xlu1 %v2820_v20, %s2686_s28 }
 0x161   :  { %2442 = vrot.lane.b32.xlu0 %v2814_v18, %s2687_s29 }
 0x162   :  { %2522 = vrot.lane.b32.xlu1 %v2818_v19, %s2687_s29 }
 0x165   :  { %2492 = vrot.lane.b32.xlu0 %v2796_v52, %s2688_s30 }
 0x166   :  { %2527 = vrot.lane.b32.xlu1 %v2820_v20, %s2687_s29 }
 0x169   :  { %2502 = vrot.lane.b32.xlu0 %v2812_v17, %s2688_s30 }
 0x16a   :  { %2532 = vrot.lane.b32.xlu1 %v2818_v19, %s2688_s30 }
 0x16d   :  { %2507 = vrot.lane.b32.xlu0 %v2814_v18, %s2688_s30 }
 0x16e   :  { %2537 = vrot.lane.b32.xlu1 %v2820_v20, %s2688_s30 }
 0x171   :  { %2542 = vrot.lane.b32.xlu0 %v2794_v51, %s2689_s10 }
 0x172   :  { %2547 = vrot.lane.b32.xlu1 %v2798_v54, %s2689_s10 }
 0x173   :  { %v2263_v62 = vpop.permute.xlu0 %2262 }
 0x174   :  { %v2265_v51 = vunpack.i.h.bf16 %v2263_v62  ;;  %v2264_v0 = vunpack.i.l.bf16 %v2263_v62  ;;  %v2323_v2 = vpop.permute.xlu1 %2322 }
 0x175   :  { %v2325_v3 = vunpack.i.h.bf16 %v2323_v2  ;;  %v2324_v4 = vunpack.i.l.bf16 %v2323_v2  ;;  %2552 = vrot.lane.b32.xlu0 %v2796_v52, %s2689_s10  ;;  %v1294_v2 = vld [vmem:[%s4522_s4 + $0x28] sm:$0xff] }
 0x176   :  { %2557 = vrot.lane.b32.xlu1 %v2800_v55, %s2689_s10 }
 0x177   :  { %v342_v52 = vsel %vm4537_vm6, %v2264_v0, %v2324_v4  ;;  %v343_v5 = vsel %vm4537_vm6, %v2265_v51, %v2325_v3  ;;  %v2268_v6 = vpop.permute.xlu0 %2267 }
 0x178   :  { %v1967_v7 = vpack.c.bf16 %v343_v5, %v342_v52  ;;  %v2270_v8 = vunpack.i.h.bf16 %v2268_v6  ;;  %v2269_v9 = vunpack.i.l.bf16 %v2268_v6  ;;  %v2328_v10 = vpop.permute.xlu1 %2327  ;;  %v1296_v5 = vld [vmem:[%s4522_s4 + $0x38] sm:$0xff] }
 0x179   :  { %v2330_v12 = vunpack.i.h.bf16 %v2328_v10  ;;  %v2329_v13 = vunpack.i.l.bf16 %v2328_v10  ;;  %2562 = vrot.lane.b32.xlu0 %v2812_v17, %s2689_s10 }
 0x17a   :  { %v339_v15 = vsel %vm4537_vm6, %v2325_v3, %v2270_v8  ;;  %v338_v16 = vsel %vm4537_vm6, %v2324_v4, %v2269_v9  ;;  %2572 = vrot.lane.b32.xlu1 %v2818_v19, %s2689_s10  ;;  %1968 = vmatprep.subr.msk.bf16.mxu0 %vm4536_vm13, %v1967_v7  ;;  %v1295_v4 = vld [vmem:[%s4522_s4 + $0x30] sm:$0xff]  ;;  %v1751_v7 = vld [vmem:[#allocation3] sm:$0x1]  ;;  %vm4603_vm13 = vcmp.lt.s32.totalorder %v2909_v30, 16 }
 0x17b   :  { %v334_v17 = vsel %vm4537_vm6, %v2269_v9, %v2329_v13  ;;  %v335_v31 = vsel %vm4537_vm6, %v2270_v8, %v2330_v12  ;;  %v346_v32 = vsel %vm4537_vm6, %v2329_v13, %v2264_v0  ;;  %v3079_v19 = vpop.permute.xlu0 %2272  ;;  %v347_v34 = vsel %vm4537_vm6, %v2330_v12, %v2265_v51  ;;  %v1293_v51 = vld [vmem:[%s4522_s4 + $0x20] sm:$0xff]  ;;  %vm4604_vm6 = vmmov %vm4603_vm13 }
 0x17c   :  { %v2075_v36 = vpack.c.bf16 %v335_v31, %v334_v17  ;;  %v3086_v37 = vpop.permute.xlu1 %2332  ;;  %v2078_v38 = vpack.c.bf16 %v339_v15, %v338_v16  ;;  %v1970_v40 = vpack.c.bf16 %v347_v34, %v346_v32  ;;  %v2275_v16 = vunpack.i.h.bf16 %v3079_v19  ;;  %vm4606_vm1 = vmmov %vm4604_vm6 }
 0x17d   :  { %2567 = vrot.lane.b32.xlu0 %v2814_v18, %s2689_s10  ;;  %v2274_v17 = vunpack.i.l.bf16 %v3079_v19  ;;  %v2335_v31 = vunpack.i.h.bf16 %v3086_v37  ;;  %v2334_v32 = vunpack.i.l.bf16 %v3086_v37 }
 0x17e   :  { %2577 = vrot.lane.b32.xlu1 %v2820_v20, %s2689_s10  ;;  %2076 = vmatprep.subr.msk.bf16.mxu1 %vm4535_vm12, %v2075_v36  ;;  %v1290_v20 = vld [vmem:[%s4522_s4 + $0x8] sm:$0xff] }
 0x17f   :  { %1971 = vmatpush1.bf16.msk.msra.mxu0 %vm4534_vm10, %v1970_v40  ;;  %v3108_v18 = vpop.permute.xlu0 %2277  ;;  %2079 = vmatpush1.bf16.msk.msra.mxu1 %vm4533_vm14, %v2078_v38  ;;  %v3172_v38 = vadd.s32 1, %v2929_v35  ;;  %v3175_v40 = vadd.s32 1, %v2960_v46  ;;  %v3182_v19 = vsel %vm4538_vm11, %v2274_v17, %v2334_v32  ;;  %v3186_v37 = vsel %vm4538_vm11, %v2275_v16, %v2335_v31  ;;  %vm4605_vm11 = vmmov %vm4604_vm6 }
 0x180   :  { %v3118_v47 = vpop.permute.xlu1 %2337  ;;  %v2280_v35 = vunpack.i.h.bf16 %v3108_v18 }
 0x181   :  { %1299 = vperm.xlu0 %2259, %v1289_v41   ;;  %v3178_v41 = vadd.s32 1, %v2968_v48  ;;  %v2340_v46 = vunpack.i.h.bf16 %v3118_v47  ;;  %v2339_v48 = vunpack.i.l.bf16 %v3118_v47  ;;  %vm4543_vm5 = vcmp.ge.s32.totalorder %v3172_v38, 0 }
 0x182   :  { %1304 = vperm.xlu1 %2260, %v1290_v20   ;;  %v3189_v20 = vadd.s32 1, %v2973_v50  ;;  %vm4550_vm14 = vcmp.lt.s32.totalorder %v3172_v38, 16  ;;  %vm4546_vm10 = vcmp.ge.s32.totalorder %v3175_v40, 0  ;;  %v3214_v47 = vadd.s32 1, %v2945_v42 }
 0x183   :  { %v3123_v53 = vpop.permute.xlu0 %2282  ;;  %v3233_v29 = vsel %vm4606_vm1, %v2280_v35, %v2340_v46 }
 0x184   :  { %v3128_v62 = vpop.permute.xlu1 %2342  ;;  %4601 = vst [vmem:[#allocation25_spill] sm:$0xff] %v3214_v47  ;;  %v4615_v23 = vunpack.i.l.bf16 %v3123_v53  ;;  %v4654_v55 = vunpack.i.l.bf16 %v3123_v53 }
 0x185   :  { %1309 = vperm.xlu0 %2259, %v1291_v49   ;;  %v2279_v49 = vunpack.i.l.bf16 %v3108_v18  ;;  %v3211_v18 = vadd.s32 1, %v2924_v33  ;;  %v2345_v25 = vunpack.i.h.bf16 %v3128_v62 }
 0x186   :  { %1314 = vperm.xlu1 %2260, %v1292_v56  }
 0x187   :  { %v3133_v0 = vpop.permute.xlu0 %2287 }
 0x188   :  { %v3138_v3 = vpop.permute.xlu1 %2347 }
 0x189   :  { %1319 = vperm.xlu0 %2259, %v1293_v51  }
 0x18a   :  { %1324 = vperm.xlu1 %2260, %v1294_v2   ;;  %v3217_v2 = vadd.s32 1, %v2956_v45 }
 0x18b   :  { %v3143_v52 = vpop.permute.xlu0 %2292 }
 0x18c   :  { %v3148_v6 = vpop.permute.xlu1 %2352  ;;  %4602 = vst [vmem:[#allocation26_spill] sm:$0xff] %v3217_v2 }
 0x18d   :  { %1329 = vperm.xlu0 %2259, %v1295_v4   ;;  %v3221_v4 = vsel %vm4603_vm13, %v2335_v31, %v2280_v35  ;;  %v2344_v31 = vunpack.i.l.bf16 %v3128_v62  ;;  %vm3261_vm13 = vmand %vm2947_vm4, %vm4543_vm5 }
 0x18e   :  { %1334 = vperm.xlu1 %2260, %v1296_v5   ;;  %v3225_v5 = vsel %vm4604_vm6, %v2334_v32, %v2279_v49  ;;  %vm4607_vm6 = vmmov %vm4606_vm1 }
 0x18f   :  { %v3150_v8 = vpop.permute.xlu0 %2297  ;;  %vm3278_vm5 = vmand %vm3003_vm0, %vm4546_vm10 }
 0x190   :  { %v3152_v9 = vpop.permute.xlu1 %2357  ;;  %v2300_v43 = vunpack.i.h.bf16 %v3150_v8 }
 0x191   :  { %1754 = vperm.xlu0 %2259, %v1751_v7   ;;  %v3229_v7 = vsel %vm4605_vm11, %v2279_v49, %v2339_v48  ;;  %vm4608_vm11 = vmmov %vm4606_vm1  ;;  %vm4616_vm1 = vcmp.lt.s32.totalorder %v2909_v30, 15 }
 0x192   :  { %v3254_v62 = vsel %vm4608_vm11, %v2340_v46, %v2275_v16  ;;  %v2289_v16 = vunpack.i.l.bf16 %v3133_v0  ;;  %vm4618_vm12 = vmmov %vm4616_vm1 }
 0x193   :  { %v3154_v10 = vpop.permute.xlu0 %2302  ;;  %vm4621_vm10 = vmmov %vm4616_vm1 }
 0x194   :  { %v3156_v12 = vpop.permute.xlu1 %2362 }
 0x195   :  { %4594 = vst [vmem:[#allocation18_spill] sm:$0xff] %v3156_v12 }
 0x197   :  { %v3158_v13 = vpop.permute.xlu0 %2307 }
 0x198   :  { %4595 = vst [vmem:[#allocation19_spill] sm:$0xff] %v3158_v13  ;;  %v3160_v15 = vpop.permute.xlu1 %2367 }
 0x199   :  { %4596 = vst [vmem:[#allocation20_spill] sm:$0xff] %v3160_v15 }
 0x19b   :  { %v3167_v34 = vpop.permute.xlu0 %2312 }
 0x19c   :  { %4597 = vst [vmem:[#allocation21_spill] sm:$0xff] %v3167_v34  ;;  %v3169_v36 = vpop.permute.xlu1 %2372  ;;  %v4617_v34 = vunpack.i.h.bf16 %v3123_v53 }
 0x19d   :  { %4598 = vst [vmem:[#allocation22_spill] sm:$0xff] %v3169_v36 }
 0x19e   :  { %v3297_v21 = vsel %vm4618_vm12, %v4617_v34, %v2345_v25 }
 0x19f   :  { %v3195_v56 = vpop.permute.xlu0 %2317 }
 0x1a0   :  { %4599 = vst [vmem:[#allocation23_spill] sm:$0xff] %v3195_v56  ;;  %v3198_v51 = vpop.permute.xlu1 %2377  ;;  %v2349_v56 = vunpack.i.l.bf16 %v3138_v3 }
 0x1a1   :  { %4600 = vst [vmem:[#allocation24_spill] sm:$0xff] %v3198_v51 }
 0x1a3   :  { %v2383_v1 = vpop.permute.xlu0 %2382 }
 0x1a4   :  { %v2385_v28 = vunpack.i.h.bf16 %v2383_v1  ;;  %v2384_v27 = vunpack.i.l.bf16 %v2383_v1  ;;  %v2448_v26 = vpop.permute.xlu1 %2447  ;;  %v3250_v1 = vsel %vm4607_vm6, %v2339_v48, %v2274_v17  ;;  %vm4611_vm6 = vcmp.lt.s32.totalorder %v2909_v30, 17 }
 0x1a5   :  { %v2450_v49 = vunpack.i.h.bf16 %v2448_v26  ;;  %v2449_v24 = vunpack.i.l.bf16 %v2448_v26  ;;  %v2290_v26 = vunpack.i.h.bf16 %v3133_v0  ;;  %vm4612_vm11 = vmmov %vm4611_vm6  ;;  %v3286_v0 = vsel %vm4616_vm1, %v4615_v23, %v2344_v31 }
 0x1a6   :  { %v2350_v23 = vunpack.i.h.bf16 %v3138_v3  ;;  %vm4622_vm12 = vmmov %vm4611_vm6 }
 0x1a7   :  { %v344_v46 = vsel %vm4611_vm6, %v2384_v27, %v2449_v24  ;;  %v345_v48 = vsel %vm4612_vm11, %v2385_v28, %v2450_v49  ;;  %v2388_v35 = vpop.permute.xlu0 %2387  ;;  %vm3307_vm11 = vmand %vm3261_vm13, %vm4550_vm14  ;;  %v3313_v34 = vsel %vm4621_vm10, %v2345_v25, %v2290_v26  ;;  %vm4624_vm14 = vcmp.lt.s32.totalorder %v3175_v40, 16 }
 0x1a8   :  { %v1973_v17 = vpack.c.bf16 %v345_v48, %v344_v46  ;;  %v2390_v51 = vunpack.i.h.bf16 %v2388_v35  ;;  %v2389_v36 = vunpack.i.l.bf16 %v2388_v35  ;;  %v2453_v22 = vpop.permute.xlu1 %2452  ;;  %v4619_v35 = vmov 0  ;;  %vm4623_vm13 = vmpackc.low %vm2983_vm8, %vm2983_vm8 }
 0x1a9   :  { %v2455_v46 = vunpack.i.h.bf16 %v2453_v22  ;;  %v2454_v48 = vunpack.i.l.bf16 %v2453_v22  ;;  %v4620_v35 = vsel %vm3307_vm11, 4294967295, %v4619_v35  ;;  %vm3329_vm10 = vmand %vm3278_vm5, %vm4624_vm14  ;;  %vm4631_vm5 = vcmp.ge.s32.totalorder %v3178_v41, 0 }
 0x1aa   :  { %v341_v22 = vsel %vm4622_vm12, %v2450_v49, %v2390_v51  ;;  %v340_v2 = vsel %vm4611_vm6, %v2449_v24, %v2389_v36  ;;  %1974 = vmatprep.subr.msk.bf16.mxu0 %vm4623_vm13, %v1973_v17  ;;  %vm4627_vm6 = vmmov %vm4616_vm1  ;;  %vm4639_vm1 = vcmp.lt.s32.totalorder %v3189_v20, 16  ;;  %vm4647_vm11 = vcmp.lt.s32.totalorder %v2909_v30, 16 }
 0x1ab   :  { %v3337_v24 = vsel %vm4627_vm6, %v2344_v31, %v2289_v16  ;;  %vm4628_vm0 = vmmov %vm4622_vm12  ;;  %v2393_v32 = vpop.permute.xlu0 %2392  ;;  %v4656_v49 = vpack.c.bf16 %v3186_v37, %v3182_v19  ;;  %v4661_v19 = vunpack.i.h.bf16 %v3123_v53  ;;  %v2294_v53 = vunpack.i.l.bf16 %v3143_v52 }
 0x1ac   :  { %v336_v57 = vsel %vm4628_vm0, %v2389_v36, %v2454_v48  ;;  %vm4629_vm8 = vmmov %vm4628_vm0  ;;  %v2395_v36 = vunpack.i.h.bf16 %v2393_v32  ;;  %v2394_v47 = vunpack.i.l.bf16 %v2393_v32  ;;  %v2458_v15 = vpop.permute.xlu1 %2457 }
 0x1ad   :  { %v337_v3 = vsel %vm4629_vm8, %v2390_v51, %v2455_v46  ;;  %vm4630_vm13 = vmmov %vm4628_vm0  ;;  %vm4636_vm8 = vcmp.ge.s32.totalorder %v2924_v33, 0  ;;  %v2084_v51 = vpack.c.bf16 %v341_v22, %v340_v2  ;;  %v2460_v13 = vunpack.i.h.bf16 %v2458_v15 }
 0x1ae   :  { %v348_v50 = vsel %vm4630_vm13, %v2454_v48, %v2384_v27  ;;  %vm3349_vm14 = vmand %vm3008_vm2, %vm4631_vm5  ;;  %v2081_v17 = vpack.c.bf16 %v337_v3, %v336_v57  ;;  %v4637_v27 = vmov 0  ;;  %v2459_v12 = vunpack.i.l.bf16 %v2458_v15 }
 0x1af   :  { %vm4634_vm6 = vmmov %vm4628_vm0  ;;  %vm4635_vm0 = vcmp.lt.s32.totalorder %v2924_v33, 16  ;;  %v1982_v33 = vpack.c.bf16 %v3254_v62, %v3250_v1  ;;  %v1991_v2 = vpack.c.bf16 %v3297_v21, %v3286_v0  ;;  %v2102_v15 = vpack.c.bf16 %v3313_v34, %v3337_v24  ;;  %v2398_v22 = vpop.permute.xlu0 %2397 }
 0x1b0   :  { %v349_v31 = vsel %vm4634_vm6, %v2455_v46, %v2385_v28  ;;  %vm3359_vm13 = vmand %vm4636_vm8, %vm4635_vm0  ;;  %vm4642_vm0 = vcmp.lt.s32.totalorder %v2909_v30, 15  ;;  %vm4644_vm6 = vcmp.lt.s32.totalorder %v3178_v41, 16  ;;  %v469_v11 = vsel %vm4647_vm11, %v2394_v47, %v2459_v12 }
 0x1b1   :  { %v4638_v27 = vsel %vm3359_vm13, 4294967295, %v4637_v27  ;;  %v1976_v48 = vpack.c.bf16 %v349_v31, %v348_v50  ;;  %vm3371_vm12 = vmand %vm3014_vm7, %vm4639_vm1  ;;  %v3383_v46 = vsel %vm4642_vm0, %v2289_v16, %v2349_v56  ;;  %v3403_v62 = vsel %vm4642_vm0, %v2290_v26, %v2350_v23  ;;  %v2463_v31 = vpop.permute.xlu1 %2462 }
 0x1b2   :  { %vm4643_vm1 = vmpackc.low %vm3047_vm3, %vm3047_vm3  ;;  %v3428_v57 = vadd.s32 1, %v2952_v44  ;;  %v2400_v50 = vunpack.i.h.bf16 %v2398_v22  ;;  %v2399_v32 = vunpack.i.l.bf16 %v2398_v22 }
 0x1b3   :  { %2082 = vmatprep.subr.msk.bf16.mxu1 %vm4643_vm1, %v2081_v17  ;;  %vm3397_vm5 = vmand %vm3349_vm14, %vm4644_vm6  ;;  %vm4651_vm6 = vcmp.ge.s32.totalorder %v2938_v39, 0  ;;  %v4658_v17 = vpack.c.bf16 %v3233_v29, %v3229_v7  ;;  %v2464_v29 = vunpack.i.l.bf16 %v2463_v31  ;;  %v2403_v26 = vpop.permute.xlu0 %2402 }
 0x1b4   :  { %vm4648_vm3 = vmmov %vm4647_vm11 }
 0x1b5   :  { %v470_v16 = vsel %vm4648_vm3, %v2395_v36, %v2460_v13  ;;  %vm4649_vm1 = vmpackc.low %vm3041_vm15, %vm3041_vm15 }
 0x1b6   :  { %1977 = vmatpush1.bf16.msk.msra.mxu0 %vm4649_vm1, %v1976_v48  ;;  %vm4650_vm14 = vmpackc.low %vm3055_vm9, %vm3055_vm9  ;;  %v1985_v14 = vpack.c.bf16 %v470_v16, %v469_v11  ;;  %v2354_v48 = vunpack.i.l.bf16 %v3148_v6  ;;  %vm4668_vm1 = vcmp.lt.s32.totalorder %v2938_v39, 16 }
 0x1b7   :  { %2085 = vmatpush1.bf16.msk.msra.mxu1 %vm4650_vm14, %v2084_v51  ;;  %vm3423_vm11 = vmand %vm3359_vm13, %vm4651_vm6  ;;  %v2465_v51 = vunpack.i.h.bf16 %v2463_v31  ;;  %v2299_v31 = vunpack.i.l.bf16 %v3150_v8 }
 0x1b8   :  { %vm4655_vm15 = vmmov %vm4642_vm0  ;;  %vm4659_vm0 = vnez %v4583_v61 }
 0x1b9   :  { %v3434_v3 = vsel %vm4655_vm15, %v2349_v56, %v4654_v55  ;;  %vm4657_vm9 = vmpackc.low %vm2947_vm4, %vm2947_vm4  ;;  %v2295_v56 = vunpack.i.h.bf16 %v3143_v52 }
 0x1ba   :  { %1980 = vmatprep.subr.msk.bf16.mxu0 %vm4657_vm9, %v4656_v49  ;;  %vm4660_vm3 = vmpackc.low %vm4659_vm0, %vm4659_vm0  ;;  %vm4664_vm9 = vcmp.ge.s32.totalorder %v2945_v42, 0 }
 0x1bb   :  { %2088 = vmatprep.subr.msk.bf16.mxu1 %vm4660_vm3, %v4658_v17  ;;  %vm4662_vm14 = vmmov %vm4655_vm15  ;;  %vm4663_vm15 = vcmp.lt.s32.totalorder %v2945_v42, 16  ;;  %v2360_v17 = vunpack.i.h.bf16 %v3152_v9 }
 0x1bc   :  { %v3459_v37 = vsel %vm4662_vm14, %v2350_v23, %v4661_v19  ;;  %vm3469_vm3 = vmand %vm4664_vm9, %vm4663_vm15  ;;  %v2355_v23 = vunpack.i.h.bf16 %v3148_v6  ;;  %vm4667_vm14 = vcmp.lt.s32.totalorder %v2909_v30, 16  ;;  %v2359_v19 = vunpack.i.l.bf16 %v3152_v9 }
 0x1bd   :  { %v466_v11 = vsel %vm4667_vm14, %v2460_v13, %v2400_v50  ;;  %vm3482_vm6 = vmand %vm3423_vm11, %vm4668_vm1  ;;  %vm4676_vm1 = vcmp.lt.s32.totalorder %v2952_v44, 16  ;;  %v1994_v8 = vpack.c.bf16 %v3459_v37, %v3434_v3  ;;  %v2099_v9 = vpack.c.bf16 %v3403_v62, %v3383_v46 }
 0x1be   :  { %vm4671_vm15 = vmmov %vm4667_vm14 }
 0x1bf   :  { %v465_v42 = vsel %vm4671_vm15, %v2459_v12, %v2399_v32  ;;  %vm4672_vm9 = vmmov %vm4667_vm14  ;;  %vm4677_vm14 = vcmp.ge.s32.totalorder %v2952_v44, 0  ;;  %v4678_v12 = vmov 0  ;;  %v2468_v44 = vpop.permute.xlu1 %2467 }
 0x1c0   :  { %v461_v22 = vsel %vm4672_vm9, %v2399_v32, %v2464_v29  ;;  %vm4673_vm8 = vmmov %vm4672_vm9  ;;  %v2404_v32 = vunpack.i.l.bf16 %v2403_v26  ;;  %v2470_v49 = vunpack.i.h.bf16 %v2468_v44 }
 0x1c1   :  { %v462_v6 = vsel %vm4673_vm8, %v2400_v50, %v2465_v51  ;;  %vm4674_vm13 = vmmov %vm4673_vm8  ;;  %v474_v55 = vsel %vm4673_vm8, %v2465_v51, %v2395_v36  ;;  %vm4687_vm8 = vcmp.ge.s32.totalorder %v2956_v45, 0  ;;  %v2096_v51 = vpack.c.bf16 %v466_v11, %v465_v42  ;;  %v2408_v11 = vpop.permute.xlu0 %2407 }
 0x1c2   :  { %v473_v13 = vsel %vm4674_vm13, %v2464_v29, %v2394_v47  ;;  %vm4675_vm11 = vmpackc.low %vm3014_vm7, %vm3014_vm7  ;;  %v2093_v50 = vpack.c.bf16 %v462_v6, %v461_v22  ;;  %v2405_v47 = vunpack.i.h.bf16 %v2403_v26  ;;  %v2410_v37 = vunpack.i.h.bf16 %v2408_v11 }
 0x1c3   :  { %1983 = vmatpush1.bf16.msk.msra.mxu0 %vm4675_vm11, %v1982_v33  ;;  %vm3503_vm15 = vmand %vm4677_vm14, %vm4676_vm1  ;;  %v4681_v33 = vpack.c.bf16 %v3221_v4, %v3225_v5  ;;  %vm4683_vm11 = vcmp.ge.s32.totalorder %v2988_v58, 0  ;;  %v2469_v4 = vunpack.i.l.bf16 %v2468_v44  ;;  %vm4686_vm14 = vcmp.lt.s32.totalorder %v2956_v45, 16  ;;  %v2473_v54 = vpop.permute.xlu1 %2472 }
 0x1c4   :  { %v4679_v12 = vsel %vm3503_vm15, 4294967295, %v4678_v12  ;;  %vm4680_vm13 = vmpackc.low %vm2947_vm4, %vm2947_vm4  ;;  %v4688_v5 = vmov 0  ;;  %v2409_v42 = vunpack.i.l.bf16 %v2408_v11  ;;  %v2475_v63 = vunpack.i.h.bf16 %v2473_v54 }
 0x1c5   :  { %1986 = vmatprep.subr.msk.bf16.mxu0 %vm4680_vm13, %v1985_v14  ;;  %vm4682_vm9 = vmpackc.low %vm3008_vm2, %vm3008_vm2  ;;  %v1988_v14 = vpack.c.bf16 %v474_v55, %v473_v13  ;;  %v2413_v36 = vpop.permute.xlu0 %2412 }
 0x1c6   :  { %2091 = vmatpush1.bf16.msk.msra.mxu1 %vm4682_vm9, %v4681_v33  ;;  %vm3526_vm1 = vmand %vm3469_vm3, %vm4683_vm11  ;;  %vm4691_vm11 = vcmp.ge.s32.totalorder %v2991_v59, 0 }
 0x1c7   :  { %vm3538_vm13 = vmand %vm4687_vm8, %vm4686_vm14  ;;  %vm4694_vm8 = vcmp.lt.s32.totalorder %v2909_v30, 15 }
 0x1c8   :  { %v4689_v5 = vsel %vm3538_vm13, 4294967295, %v4688_v5  ;;  %vm4690_vm9 = vmpackc.low %vm4659_vm0, %vm4659_vm0  ;;  %v574_v29 = vsel %vm4694_vm8, %v2404_v32, %v2469_v4 }
 0x1c9   :  { %2094 = vmatprep.subr.msk.bf16.mxu1 %vm4690_vm9, %v2093_v50  ;;  %vm3554_vm14 = vmand %vm3503_vm15, %vm4691_vm11  ;;  %vm4697_vm11 = vcmp.lt.s32.totalorder %v2988_v58, 16  ;;  %v2418_v25 = vpop.permute.xlu0 %2417 }
 0x1ca   :  { %vm4695_vm0 = vmmov %vm4694_vm8  ;;  %vm4700_vm8 = vcmp.lt.s32.totalorder %v2909_v30, 1 }
 0x1cb   :  { %v575_v61 = vsel %vm4695_vm0, %v2405_v47, %v2470_v49  ;;  %vm4696_vm9 = vmpackc.low %vm3014_vm7, %vm3014_vm7  ;;  %v681_v46 = vsel %vm4700_vm8, %v2294_v53, %v2354_v48  ;;  %vm4701_vm7 = vnez %v4620_v35  ;;  %v682_v21 = vsel %vm4700_vm8, %v2295_v56, %v2355_v23 }
 0x1cc   :  { %1989 = vmatpush1.bf16.msk.msra.mxu0 %vm4696_vm9, %v1988_v14  ;;  %vm3575_vm4 = vmand %vm3526_vm1, %vm4697_vm11  ;;  %v1997_v62 = vpack.c.bf16 %v575_v61, %v574_v29  ;;  %vm4704_vm9 = vcmp.ge.s32.totalorder %v2994_v60, 0  ;;  %v2420_v29 = vunpack.i.h.bf16 %v2418_v25  ;;  %v2419_v61 = vunpack.i.l.bf16 %v2418_v25 }
 0x1cd   :  { %vm4702_vm0 = vmpackc.low %vm4701_vm7, %vm4701_vm7 }
 0x1ce   :  { %1992 = vmatprep.subr.msk.bf16.mxu0 %vm4702_vm0, %v1991_v2  ;;  %vm4703_vm1 = vmpackc.low %vm3008_vm2, %vm3008_vm2  ;;  %v2474_v2 = vunpack.i.l.bf16 %v2473_v54 }
 0x1cf   :  { %2097 = vmatpush1.bf16.msk.msra.mxu1 %vm4703_vm1, %v2096_v51  ;;  %vm3600_vm11 = vmand %vm3538_vm13, %vm4704_vm9  ;;  %vm4709_vm1 = vcmp.lt.s32.totalorder %v2991_v59, 16  ;;  %vm4714_vm13 = vcmp.lt.s32.totalorder %v2909_v30, 15 }
 0x1d0   :  { %vm4707_vm0 = vmmov %vm4700_vm8  ;;  %v571_v55 = vsel %vm4714_vm13, %v2470_v49, %v2410_v37  ;;  %v2414_v49 = vunpack.i.l.bf16 %v2413_v36 }
 0x1d1   :  { %v3610_v0 = vsel %vm4707_vm0, %v2355_v23, %v2300_v43  ;;  %vm4708_vm2 = vmpackc.low %vm3329_vm10, %vm3329_vm10  ;;  %v673_v13 = vsel %vm4707_vm0, %v2299_v31, %v2359_v19 }
 0x1d2   :  { %2100 = vmatprep.subr.msk.bf16.mxu1 %vm4708_vm2, %v2099_v9  ;;  %vm3621_vm9 = vmand %vm3554_vm14, %vm4709_vm1  ;;  %v2305_v9 = vunpack.i.h.bf16 %v3154_v10 }
 0x1d3   :  { %vm4712_vm8 = vmmov %vm4707_vm0 }
 0x1d4   :  { %v3627_v23 = vsel %vm4712_vm8, %v2354_v48, %v2299_v31  ;;  %vm4713_vm15 = vmmov %vm4707_vm0 }
 0x1d5   :  { %v674_v26 = vsel %vm4713_vm15, %v2300_v43, %v2360_v17  ;;  %vm4565_vm14 = vmpackc.low %vm3575_vm4, %vm3575_vm4  ;;  %v2114_v34 = vpack.c.bf16 %v3610_v0, %v3627_v23  ;;  %v2608_v23 = vld [vmem:[%s4521_s3 + $0x4c] ss:$12 sps:$4 sm:$0xff]  }
 0x1d6   :  { %vm4715_vm1 = vmmov %vm4714_vm13 }
 0x1d7   :  { %v570_v50 = vsel %vm4715_vm1, %v2469_v4, %v2409_v42  ;;  %vm4716_vm8 = vmmov %vm4715_vm1  ;;  %v2478_v4 = vpop.permute.xlu1 %2477 }
 0x1d8   :  { %v566_v48 = vsel %vm4716_vm8, %v2409_v42, %v2474_v2  ;;  %vm4717_vm0 = vmmov %vm4715_vm1  ;;  %v2480_v51 = vunpack.i.h.bf16 %v2478_v4  ;;  %v2479_v35 = vunpack.i.l.bf16 %v2478_v4  ;;  %v2108_v45 = vpack.c.bf16 %v571_v55, %v570_v50 }
 0x1d9   :  { %v567_v33 = vsel %vm4717_vm0, %v2410_v37, %v2475_v63  ;;  %vm4718_vm15 = vmmov %vm4717_vm0  ;;  %v579_v43 = vsel %vm4717_vm0, %v2475_v63, %v2405_v47  ;;  %v2003_v47 = vpack.c.bf16 %v682_v21, %v681_v46  ;;  %v4739_v21 = vld [vmem:[#allocation19_spill] sm:$0xff] }
 0x1da   :  { %v578_v44 = vsel %vm4718_vm15, %v2474_v2, %v2404_v32  ;;  %vm4719_vm13 = vmpackc.low %vm3371_vm12, %vm3371_vm12  ;;  %v2105_v14 = vpack.c.bf16 %v567_v33, %v566_v48  ;;  %v2415_v32 = vunpack.i.h.bf16 %v2413_v36  ;;  %v2310_v0 = vunpack.i.h.bf16 %v4739_v21  ;;  %v3768_v48 = vpop.permute.xlu0 %2422 }
 0x1db   :  { %1995 = vmatpush1.bf16.msk.msra.mxu0 %vm4719_vm13, %v1994_v8  ;;  %vm4720_vm15 = vmpackc.low %vm4701_vm7, %vm4701_vm7  ;;  %v2000_v31 = vpack.c.bf16 %v579_v43, %v578_v44  ;;  %vm4722_vm7 = vnez %v4638_v27  ;;  %v2111_v8 = vpack.c.bf16 %v674_v26, %v673_v13  ;;  %v2483_v28 = vpop.permute.xlu1 %2482  ;;  %v2309_v63 = vunpack.i.l.bf16 %v4739_v21  ;;  %v4752_v44 = vld [vmem:[#allocation20_spill] sm:$0xff] }
 0x1dc   :  { %1998 = vmatprep.subr.msk.bf16.mxu0 %vm4720_vm15, %v1997_v62  ;;  %vm4721_vm13 = vmpackc.low %vm3397_vm5, %vm3397_vm5  ;;  %v4737_v62 = vld [vmem:[#allocation18_spill] sm:$0xff]  ;;  %v2485_v42 = vunpack.i.h.bf16 %v2483_v28  ;;  %v2484_v54 = vunpack.i.l.bf16 %v2483_v28  ;;  %v4750_v33 = vmov 0  ;;  %v2370_v36 = vunpack.i.h.bf16 %v4752_v44  ;;  %v4780_v28 = vld [vmem:[#allocation21_spill] sm:$0xff] }
 0x1dd   :  { %2103 = vmatpush1.bf16.msk.msra.mxu1 %vm4721_vm13, %v2102_v15  ;;  %vm4723_vm13 = vcmp.lt.s32.totalorder %v2909_v30, 1  ;;  %vm4725_vm8 = vmpackc.low %vm3329_vm10, %vm3329_vm10  ;;  %vm4729_vm10 = vcmp.ge.s32.totalorder %v3172_v38, 0  ;;  %v2364_v37 = vunpack.i.l.bf16 %v4737_v62  ;;  %v2365_v1 = vunpack.i.h.bf16 %v4737_v62  ;;  %v4786_v62 = vld [vmem:[#allocation22_spill] sm:$0xff] }
 0x1de   :  { %v685_v24 = vsel %vm4723_vm13, %v2359_v19, %v2294_v53  ;;  %vm4724_vm2 = vmmov %vm4723_vm13  ;;  %2106 = vmatprep.subr.msk.bf16.mxu1 %vm4725_vm8, %v2105_v14  ;;  %v2369_v43 = vunpack.i.l.bf16 %v4752_v44  ;;  %v3851_v3 = vpop.permute.xlu0 %2427  ;;  %v4777_v53 = vld [vmem:[#allocation10_spill] sm:$0xff]  ;;  %v2314_v11 = vunpack.i.l.bf16 %v4780_v28 }
 0x1df   :  { %v686_v15 = vsel %vm4724_vm2, %v2360_v17, %v2295_v56  ;;  %vm4726_vm13 = vmmov %vm4724_vm2  ;;  %v2304_v17 = vunpack.i.l.bf16 %v3154_v10  ;;  %v3792_v4 = vpop.permute.xlu1 %2487  ;;  %v2430_v27 = vunpack.i.h.bf16 %v3851_v3 }
 0x1e0   :  { %v683_v52 = vsel %vm4726_vm13, %v2414_v49, %v2479_v35  ;;  %vm4727_vm0 = vmmov %vm4724_vm2  ;;  %vm4734_vm13 = vcmp.ge.s32.totalorder %v3175_v40, 0  ;;  %v2006_v46 = vpack.c.bf16 %v686_v15, %v685_v24 }
 0x1e1   :  { %v684_v56 = vsel %vm4727_vm0, %v2415_v32, %v2480_v51  ;;  %vm4728_vm2 = vmpackc.low %vm3371_vm12, %vm3371_vm12 }
 0x1e2   :  { %2001 = vmatpush1.bf16.msk.msra.mxu0 %vm4728_vm2, %v2000_v31  ;;  %vm3710_vm8 = vmand %vm4722_vm7, %vm4729_vm10  ;;  %v2009_v19 = vpack.c.bf16 %v684_v56, %v683_v52  ;;  %v4761_v31 = vld [vmem:[#allocation25_spill] sm:$0xff]  ;;  %v4776_v52 = vld [vmem:[#allocation23_spill] sm:$0xff] }
 0x1e3   :  { %vm4732_vm12 = vmpackc.low %vm3482_vm6, %vm3482_vm6  ;;  %v2320_v56 = vunpack.i.h.bf16 %v4776_v52  ;;  %v2319_v25 = vunpack.i.l.bf16 %v4776_v52 }
 0x1e4   :  { %2004 = vmatprep.subr.msk.bf16.mxu0 %vm4732_vm12, %v2003_v47  ;;  %vm4733_vm0 = vmpackc.low %vm3397_vm5, %vm3397_vm5  ;;  %vm4738_vm5 = vnez %v4689_v5  ;;  %vm4740_vm12 = vcmp.lt.s32.totalorder %v2909_v30, 1  ;;  %v4822_v5 = vld [vmem:[#allocation17_spill] sm:$0xff] }
 0x1e5   :  { %2109 = vmatpush1.bf16.msk.msra.mxu1 %vm4733_vm0, %v2108_v45  ;;  %vm3729_vm2 = vmand %vm3469_vm3, %vm4734_vm13  ;;  %v680_v2 = vsel %vm4740_vm12, %v2480_v51, %v2420_v29  ;;  %vm4741_vm0 = vcmp.lt.s32.totalorder %v3172_v38, 16 }
 0x1e6   :  { %2112 = vmatprep.subr.msk.bf16.mxu1 %vm4565_vm14, %v2111_v8  ;;  %vm3751_vm13 = vmand %vm3710_vm8, %vm4741_vm0 }
 0x1e7   :  { %vm4744_vm15 = vmmov %vm4740_vm12 }
 0x1e8   :  { %v679_v13 = vsel %vm4744_vm15, %v2479_v35, %v2419_v61  ;;  %vm4745_vm10 = vmmov %vm4740_vm12  ;;  %vm4749_vm12 = vcmp.lt.s32.totalorder %v3175_v40, 16 }
 0x1e9   :  { %v675_v26 = vsel %vm4745_vm10, %v2419_v61, %v2484_v54  ;;  %vm4746_vm14 = vmmov %vm4745_vm10  ;;  %v2120_v24 = vpack.c.bf16 %v680_v2, %v679_v13 }
 0x1ea   :  { %v676_v55 = vsel %vm4746_vm14, %v2420_v29, %v2485_v42  ;;  %vm4747_vm1 = vmmov %vm4745_vm10  ;;  %vm4756_vm10 = vnez %v4679_v12 }
 0x1eb   :  { %v687_v50 = vsel %vm4747_vm1, %v2484_v54, %v2414_v49  ;;  %vm4748_vm8 = vmpackc.low %vm3600_vm11, %vm3600_vm11  ;;  %v2117_v49 = vpack.c.bf16 %v676_v55, %v675_v26  ;;  %v4787_v54 = vld [vmem:[#allocation24_spill] sm:$0xff]  ;;  %v2315_v26 = vunpack.i.h.bf16 %v4780_v28 }
 0x1ec   :  { %2007 = vmatpush1.bf16.msk.msra.mxu0 %vm4748_vm8, %v2006_v46  ;;  %vm3774_vm15 = vmand %vm3729_vm2, %vm4749_vm12  ;;  %vm4757_vm8 = vcmp.lt.s32.totalorder %v2909_v30, 127  ;;  %v4781_v46 = vld [vmem:[#allocation11_spill] sm:$0xff]  ;;  %v2379_v21 = vunpack.i.l.bf16 %v4787_v54  ;;  %v4793_v55 = vld [vmem:[#allocation12_spill] sm:$0xff] }
 0x1ed   :  { %v4751_v33 = vsel %vm3774_vm15, 4294967295, %v4750_v33  ;;  %vm4753_vm14 = vmmov %vm4747_vm1  ;;  %v3820_v51 = vsel %vm4757_vm8, %v2305_v9, %v2365_v1 }
 0x1ee   :  { %v688_v14 = vsel %vm4753_vm14, %v2485_v42, %v2415_v32  ;;  %vm4754_vm1 = vmpackc.low %vm3482_vm6, %vm3482_vm6  ;;  %v3801_v32 = vsel %vm4757_vm8, %v2304_v17, %v2364_v37  ;;  %vm4758_vm14 = vcmp.lt.s32.totalorder %v3189_v20, 16  ;;  %vm4765_vm6 = vcmp.lt.s32.totalorder %v3211_v18, 16 }
 0x1ef   :  { %2010 = vmatprep.subr.msk.bf16.mxu0 %vm4754_vm1, %v2009_v19  ;;  %vm4755_vm2 = vmpackc.low %vm3621_vm9, %vm3621_vm9  ;;  %v2012_v16 = vpack.c.bf16 %v688_v14, %v687_v50  ;;  %v3886_v19 = vpop.permute.xlu1 %2497  ;;  %v2030_v29 = vpack.c.bf16 %v3820_v51, %v3801_v32  ;;  %v2374_v42 = vunpack.i.l.bf16 %v4786_v62  ;;  %v2433_v50 = vpop.permute.xlu0 %2432  ;;  %v4802_v14 = vld [vmem:[#allocation14_spill] sm:$0xff] }
 0x1f0   :  { %2115 = vmatpush1.bf16.msk.msra.mxu1 %vm4755_vm2, %v2114_v34  ;;  %vm3811_vm1 = vmand %vm4738_vm5, %vm4758_vm14  ;;  %v2435_v44 = vunpack.i.h.bf16 %v2433_v50 }
 0x1f1   :  { %vm4762_vm0 = vmmov %vm4757_vm8 }
 0x1f2   :  { %v3824_v35 = vsel %vm4762_vm0, %v2365_v1, %v2310_v0  ;;  %vm4763_vm12 = vmmov %vm4762_vm0  ;;  %vm4766_vm0 = vcmp.ge.s32.totalorder %v3211_v18, 0  ;;  %v4773_v18 = vld [vmem:[#allocation26_spill] sm:$0xff]  ;;  %v2380_v1 = vunpack.i.h.bf16 %v4787_v54  ;;  %v4825_v54 = vmov 0 }
 0x1f3   :  { %v3828_v34 = vsel %vm4763_vm12, %v2364_v37, %v2309_v63  ;;  %vm4764_vm14 = vmpackc.low %vm3575_vm4, %vm3575_vm4  ;;  %vm4770_vm4 = vcmp.ge.s32.totalorder %v3178_v41, 0  ;;  %v2375_v37 = vunpack.i.h.bf16 %v4786_v62 }
 0x1f4   :  { %2118 = vmatprep.subr.msk.bf16.mxu1 %vm4764_vm14, %v2117_v49  ;;  %vm3842_vm2 = vmand %vm4766_vm0, %vm4765_vm6  ;;  %vm954_vm6 = vcmp.lt.s32.totalorder %v4761_v31, 16  ;;  %v2027_v61 = vpack.c.bf16 %v3824_v35, %v3828_v34  ;;  %v2513_v49 = vpop.permute.xlu1 %2512 }
 0x1f5   :  { %vm4769_vm12 = vmpackc.low %vm3600_vm11, %vm3600_vm11  ;;  %v2515_v35 = vunpack.i.h.bf16 %v2513_v49  ;;  %v2514_v34 = vunpack.i.l.bf16 %v2513_v49 }
 0x1f6   :  { %2013 = vmatpush1.bf16.msk.msra.mxu0 %vm4769_vm12, %v2012_v16  ;;  %vm3857_vm14 = vmand %vm4756_vm10, %vm4770_vm4 }
 0x1f7   :  { %vm4774_vm11 = vmmov %vm4757_vm8 }
 0x1f8   :  { %v3867_v22 = vsel %vm4774_vm11, %v2309_v63, %v2369_v43  ;;  %vm4775_vm12 = vmmov %vm4757_vm8 }
 0x1f9   :  { %v3871_v8 = vsel %vm4775_vm12, %v2310_v0, %v2370_v36  ;;  %vm4778_vm4 = vmpackc.low %vm4722_vm7, %vm4722_vm7  ;;  %vm953_vm12 = vcmp.lt.s32.totalorder %v3428_v57, 16 }
 0x1fa   :  { %2016 = vmatprep.subr.msk.bf16.mxu0 %vm4778_vm4, %v4777_v53  ;;  %vm4779_vm11 = vmpackc.low %vm3621_vm9, %vm3621_vm9  ;;  %vm4783_vm4 = vcmp.ge.s32.totalorder %v2938_v39, 0  ;;  %v2138_v13 = vpack.c.bf16 %v3871_v8, %v3867_v22 }
 0x1fb   :  { %2121 = vmatpush1.bf16.msk.msra.mxu1 %vm4779_vm11, %v2120_v24  ;;  %vm4782_vm9 = vmpackc.low %vm3469_vm3, %vm3469_vm3  ;;  %v4807_v24 = vld [vmem:[#allocation15_spill] sm:$0xff] }
 0x1fc   :  { %2124 = vmatprep.subr.msk.bf16.mxu1 %vm4782_vm9, %v4781_v46  ;;  %vm3906_vm11 = vmand %vm3842_vm2, %vm4783_vm4  ;;  %vm4788_vm9 = vcmp.lt.s32.totalorder %v3178_v41, 16  ;;  %v4021_v46 = vpop.permute.xlu0 %2437 }
 0x1fd   :  { %vm3919_vm0 = vmand %vm3857_vm14, %vm4788_vm9  ;;  %vm4795_vm9 = vcmp.ge.s32.totalorder %v4761_v31, 0  ;;  %v2429_v31 = vunpack.i.l.bf16 %v3851_v3  ;;  %v2440_v51 = vunpack.i.h.bf16 %v4021_v46 }
 0x1fe   :  { %vm4791_vm4 = vmmov %vm4757_vm8 }
 0x1ff   :  { %v842_v63 = vsel %vm4791_vm4, %v2369_v43, %v2304_v17  ;;  %vm4792_vm8 = vmmov %vm4791_vm4  ;;  %v4800_v43 = vld [vmem:[#allocation13_spill] sm:$0xff] }
 0x200   :  { %v843_v2 = vsel %vm4792_vm8, %v2370_v36, %v2305_v9  ;;  %vm4794_vm14 = vmpackc.low %vm4738_vm5, %vm4738_vm5  ;;  %vm4798_vm8 = vcmp.lt.s32.totalorder %v2909_v30, 113  ;;  %v2434_v36 = vunpack.i.l.bf16 %v2433_v50 }
 0x201   :  { %2019 = vmatpush1.bf16.msk.msra.mxu0 %vm4794_vm14, %v4793_v55  ;;  %vm3944_vm4 = vmand %vm4795_vm9, %vm954_vm6  ;;  %v3950_v9 = vsel %vm4798_vm8, %v2375_v37, %v2320_v56  ;;  %v3989_v45 = vsel %vm4798_vm8, %v2314_v11, %v2374_v42 }
 0x202   :  { %vm4799_vm15 = vmmov %vm4798_vm8 }
 0x203   :  { %v3954_v17 = vsel %vm4799_vm15, %v2374_v42, %v2319_v25  ;;  %vm4801_vm14 = vmpackc.low %vm4722_vm7, %vm4722_vm7  ;;  %vm4804_vm15 = vcmp.lt.s32.totalorder %v2938_v39, 16  ;;  %v2135_v39 = vpack.c.bf16 %v843_v2, %v842_v63 }
 0x204   :  { %2022 = vmatprep.subr.msk.bf16.mxu0 %vm4801_vm14, %v4800_v43  ;;  %vm4803_vm6 = vmpackc.low %vm4756_vm10, %vm4756_vm10  ;;  %v2039_v62 = vpack.c.bf16 %v3950_v9, %v3954_v17 }
 0x205   :  { %2127 = vmatpush1.bf16.msk.msra.mxu1 %vm4803_vm6, %v4802_v14  ;;  %vm3972_vm9 = vmand %vm3906_vm11, %vm4804_vm15 }
 0x206   :  { %vm4808_vm7 = vmpackc.low %vm3469_vm3, %vm3469_vm3  ;;  %vm4811_vm3 = vcmp.ge.s32.totalorder %v2988_v58, 0 }
 0x207   :  { %2130 = vmatprep.subr.msk.bf16.mxu1 %vm4808_vm7, %v4807_v24  ;;  %vm4809_vm14 = vmmov %vm4798_vm8  ;;  %vm4814_vm7 = vcmp.lt.s32.totalorder %v2909_v30, 127 }
 0x208   :  { %v3993_v3 = vsel %vm4809_vm14, %v2379_v21, %v2314_v11  ;;  %vm4810_vm6 = vmmov %vm4798_vm8  ;;  %v836_v8 = vsel %vm4814_vm7, %v2514_v34, %v2434_v36  ;;  %v4818_v11 = vld [vmem:[#allocation16_spill] sm:$0xff] }
 0x209   :  { %v3997_v22 = vsel %vm4810_vm6, %v2380_v1, %v2315_v26  ;;  %vm4003_vm15 = vmand %vm3944_vm4, %vm4811_vm3 }
 0x20a   :  { %vm4815_vm8 = vmmov %vm4814_vm7 }
 0x20b   :  { %v837_v52 = vsel %vm4815_vm8, %v2515_v35, %v2435_v44  ;;  %vm4816_vm14 = vmmov %vm4814_vm7  ;;  %vm4820_vm8 = vcmp.lt.s32.totalorder %v2909_v30, 113 }
 0x20c   :  { %v840_v53 = vsel %vm4816_vm14, %v2429_v31, %v2514_v34  ;;  %vm4817_vm6 = vmmov %vm4814_vm7  ;;  %v4028_v6 = vsel %vm4820_vm8, %v2315_v26, %v2375_v37  ;;  %v2033_v42 = vpack.c.bf16 %v837_v52, %v836_v8  ;;  %v2518_v37 = vpop.permute.xlu1 %2517  ;;  %vm4827_vm14 = vcmp.lt.s32.totalorder %v2909_v30, 113 }
 0x20d   :  { %v841_v28 = vsel %vm4817_vm6, %v2430_v27, %v2515_v35  ;;  %vm4819_vm3 = vmpackc.low %vm4738_vm5, %vm4738_vm5  ;;  %v4054_v63 = vsel %vm4827_vm14, %v2319_v25, %v2379_v21  ;;  %v2520_v12 = vunpack.i.h.bf16 %v2518_v37  ;;  %v2519_v2 = vunpack.i.l.bf16 %v2518_v37 }
 0x20e   :  { %2025 = vmatpush1.bf16.msk.msra.mxu0 %vm4819_vm3, %v4818_v11  ;;  %vm4821_vm5 = vmpackc.low %vm3751_vm13, %vm3751_vm13  ;;  %vm4824_vm3 = vcmp.ge.s32.totalorder %v3428_v57, 0  ;;  %v2424_v25 = vunpack.i.l.bf16 %v3768_v48  ;;  %v2036_v21 = vpack.c.bf16 %v841_v28, %v840_v53  ;;  %v2500_v35 = vunpack.i.h.bf16 %v3886_v19 }
 0x20f   :  { %2028 = vmatprep.subr.msk.bf16.mxu0 %vm4821_vm5, %v2027_v61  ;;  %vm4823_vm6 = vmpackc.low %vm4756_vm10, %vm4756_vm10  ;;  %vm4829_vm10 = vnez %v4751_v33  ;;  %v844_v50 = vsel %vm4814_vm7, %v2519_v2, %v2429_v31  ;;  %v2490_v31 = vunpack.i.h.bf16 %v3792_v4  ;;  %v2499_v34 = vunpack.i.l.bf16 %v3886_v19 }
 0x210   :  { %2133 = vmatpush1.bf16.msk.msra.mxu1 %vm4823_vm6, %v4822_v5  ;;  %vm4048_vm8 = vmand %vm4824_vm3, %vm953_vm12  ;;  %vm4831_vm12 = vcmp.lt.s32.totalorder %v2988_v58, 16  ;;  %v2523_v32 = vpop.permute.xlu1 %2522  ;;  %v2042_v24 = vpack.c.bf16 %v4028_v6, %v3989_v45 }
 0x211   :  { %v4826_v54 = vsel %vm4048_vm8, 4294967295, %v4825_v54  ;;  %vm4828_vm5 = vmmov %vm4827_vm14  ;;  %vm4834_vm14 = vcmp.lt.s32.totalorder %v4773_v18, 16  ;;  %v2525_v49 = vunpack.i.h.bf16 %v2523_v32 }
 0x212   :  { %v4058_v61 = vsel %vm4828_vm5, %v2320_v56, %v2380_v1  ;;  %vm4830_vm6 = vmpackc.low %vm4829_vm10, %vm4829_vm10  ;;  %v2147_v56 = vpack.c.bf16 %v3997_v22, %v3993_v3  ;;  %v2489_v1 = vunpack.i.l.bf16 %v3792_v4  ;;  %vm4835_vm5 = vcmp.ge.s32.totalorder %v4773_v18, 0  ;;  %v2443_v18 = vpop.permute.xlu0 %2442 }
 0x213   :  { %2136 = vmatprep.subr.msk.bf16.mxu1 %vm4830_vm6, %v2135_v39  ;;  %vm4069_vm3 = vmand %vm4003_vm15, %vm4831_vm12  ;;  %v2445_v43 = vunpack.i.h.bf16 %v2443_v18  ;;  %v2444_v14 = vunpack.i.l.bf16 %v2443_v18  ;;  %v2150_v45 = vpack.c.bf16 %v4058_v61, %v4054_v63  ;;  %v2605_v18 = vld [vmem:[%s4521_s3 + $0x34] ss:$12 sps:$4 sm:$0xff]  }
 0x214   :  { %vm4081_vm6 = vmand %vm4835_vm5, %vm4834_vm14  ;;  %vm4842_vm5 = vcmp.ge.s32.totalorder %v2991_v59, 0  ;;  %v2528_v47 = vpop.permute.xlu1 %2527 }
 0x215   :  { %vm4838_vm15 = vmmov %vm4814_vm7  ;;  %v2530_v8 = vunpack.i.h.bf16 %v2528_v47  ;;  %v2529_v52 = vunpack.i.l.bf16 %v2528_v47 }
 0x216   :  { %v832_v26 = vsel %vm4838_vm15, %v2434_v36, %v2519_v2  ;;  %vm4839_vm12 = vmmov %vm4814_vm7 }
 0x217   :  { %v833_v55 = vsel %vm4839_vm12, %v2435_v44, %v2520_v12  ;;  %vm4840_vm11 = vmmov %vm4814_vm7 }
 0x218   :  { %v845_v9 = vsel %vm4840_vm11, %v2520_v12, %v2430_v27  ;;  %vm4841_vm14 = vmpackc.low %vm3811_vm1, %vm3811_vm1  ;;  %v2144_v36 = vpack.c.bf16 %v833_v55, %v832_v26  ;;  %v2524_v27 = vunpack.i.l.bf16 %v2523_v32  ;;  %v2533_v2 = vpop.permute.xlu1 %2532 }
 0x219   :  { %2031 = vmatpush1.bf16.msk.msra.mxu0 %vm4841_vm14, %v2030_v29  ;;  %vm4105_vm15 = vmand %vm4048_vm8, %vm4842_vm5  ;;  %v2141_v44 = vpack.c.bf16 %v845_v9, %v844_v50  ;;  %v2439_v29 = vunpack.i.l.bf16 %v4021_v46 }
 0x21a   :  { %vm4845_vm11 = vmpackc.low %vm3751_vm13, %vm3751_vm13  ;;  %vm4847_vm13 = vcmp.ge.s32.totalorder %v2994_v60, 0 }
 0x21b   :  { %2034 = vmatprep.subr.msk.bf16.mxu0 %vm4845_vm11, %v2033_v42  ;;  %vm4846_vm7 = vmpackc.low %vm3919_vm0, %vm3919_vm0  ;;  %vm4851_vm11 = vcmp.lt.s32.totalorder %v2991_v59, 16  ;;  %v2493_v59 = vpop.permute.xlu0 %2492 }
 0x21c   :  { %2139 = vmatpush1.bf16.msk.msra.mxu1 %vm4846_vm7, %v2138_v13  ;;  %vm4128_vm14 = vmand %vm4081_vm6, %vm4847_vm13  ;;  %v2425_v13 = vunpack.i.h.bf16 %v3768_v48  ;;  %vm4854_vm13 = vcmp.lt.s32.totalorder %v2909_v30, 113  ;;  %v2495_v3 = vunpack.i.h.bf16 %v2493_v59  ;;  %v2494_v22 = vunpack.i.l.bf16 %v2493_v59  ;;  %v2538_v57 = vpop.permute.xlu1 %2537 }
 0x21d   :  { %vm4850_vm5 = vmpackc.low %vm4829_vm10, %vm4829_vm10  ;;  %v933_v48 = vsel %vm4854_vm13, %v2524_v27, %v2444_v14  ;;  %v2540_v32 = vunpack.i.h.bf16 %v2538_v57 }
 0x21e   :  { %2142 = vmatprep.subr.msk.bf16.mxu1 %vm4850_vm5, %v2141_v44  ;;  %vm4145_vm7 = vmand %vm4105_vm15, %vm4851_vm11  ;;  %vm4861_vm5 = vcmp.lt.s32.totalorder %v2909_v30, 112 }
 0x21f   :  { %vm4855_vm12 = vmmov %vm4854_vm13  ;;  %v1048_v7 = vsel %vm4861_vm5, %v2424_v25, %v2489_v1  ;;  %v2503_v5 = vpop.permute.xlu0 %2502 }
 0x220   :  { %v934_v4 = vsel %vm4855_vm12, %v2525_v49, %v2445_v43  ;;  %vm4856_vm8 = vmmov %vm4855_vm12  ;;  %v2505_v12 = vunpack.i.h.bf16 %v2503_v5 }
 0x221   :  { %v937_v19 = vsel %vm4856_vm8, %v2439_v29, %v2524_v27  ;;  %vm4857_vm10 = vmmov %vm4856_vm8  ;;  %v2045_v39 = vpack.c.bf16 %v934_v4, %v933_v48 }
 0x222   :  { %v938_v33 = vsel %vm4857_vm10, %v2440_v51, %v2525_v49  ;;  %vm4858_vm15 = vmpackc.low %vm3811_vm1, %vm3811_vm1 }
 0x223   :  { %2037 = vmatpush1.bf16.msk.msra.mxu0 %vm4858_vm15, %v2036_v21  ;;  %vm4859_vm8 = vmpackc.low %vm3972_vm9, %vm3972_vm9  ;;  %v2048_v11 = vpack.c.bf16 %v938_v33, %v937_v19  ;;  %v2534_v21 = vunpack.i.l.bf16 %v2533_v2  ;;  %v2508_v9 = vpop.permute.xlu0 %2507  ;;  %v2548_v33 = vpop.permute.xlu1 %2547 }
 0x224   :  { %2040 = vmatprep.subr.msk.bf16.mxu0 %vm4859_vm8, %v2039_v62  ;;  %vm4860_vm12 = vmpackc.low %vm3919_vm0, %vm3919_vm0  ;;  %v2510_v44 = vunpack.i.h.bf16 %v2508_v9 }
 0x225   :  { %2145 = vmatpush1.bf16.msk.msra.mxu1 %vm4860_vm12, %v2144_v36  ;;  %vm2041_vm1 = vmpackc.low %vm4128_vm14, %vm4128_vm14  ;;  %v2509_v36 = vunpack.i.l.bf16 %v2508_v9 }
 0x226   :  { %vm4862_vm11 = vmpackc.low %vm4069_vm3, %vm4069_vm3 }
 0x227   :  { %2148 = vmatprep.subr.msk.bf16.mxu1 %vm4862_vm11, %v2147_v56  ;;  %vm2149_vm0 = vmpackc.low %vm4145_vm7, %vm4145_vm7  ;;  %2043 = vmatpush1.bf16.msk.msra.mxu0 %vm2041_vm1, %v2042_v24  ;;  %vm4880_vm7 = vnez %v4826_v54  ;;  %v2558_v10 = vpop.permute.xlu1 %2557 }
 0x228   :  { %vm4863_vm13 = vmmov %vm4861_vm5 }
 0x229   :  { %v1049_v0 = vsel %vm4863_vm13, %v2425_v13, %v2490_v31  ;;  %vm4864_vm10 = vmmov %vm4861_vm5  ;;  %2151 = vmatpush1.bf16.msk.msra.mxu1 %vm2149_vm0, %v2150_v45 }
 0x22a   :  { %v1052_v53 = vsel %vm4864_vm10, %v2499_v34, %v2424_v25  ;;  %vm4865_vm15 = vmmov %vm4861_vm5  ;;  %v2504_v25 = vunpack.i.l.bf16 %v2503_v5  ;;  %v2054_v17 = vpack.c.bf16 %v1049_v0, %v1048_v7  ;;  %v2602_v0 = vld [vmem:[%s4521_s3 + $0x1c] ss:$12 sps:$4 sm:$0xff]  }
 0x22b   :  { %v1053_v28 = vsel %vm4865_vm15, %v2500_v35, %v2425_v13  ;;  %vm4866_vm8 = vmmov %vm4861_vm5 }
 0x22c   :  { %v1045_v46 = vsel %vm4866_vm8, %v2490_v31, %v2495_v3  ;;  %vm4867_vm12 = vmmov %vm4861_vm5  ;;  %vm4868_vm5 = vcmp.lt.s32.totalorder %v2909_v30, 113  ;;  %v2159_v16 = vpack.c.bf16 %v1053_v28, %v1052_v53  ;;  %v2560_v28 = vunpack.i.h.bf16 %v2558_v10 }
 0x22d   :  { %v1044_v6 = vsel %vm4867_vm12, %v2489_v1, %v2494_v22  ;;  %v929_v62 = vsel %vm4868_vm5, %v2444_v14, %v2529_v52  ;;  %vm4869_vm11 = vmmov %vm4868_vm5  ;;  %v2535_v1 = vunpack.i.h.bf16 %v2533_v2  ;;  %v1041_v55 = vsel %vm4867_vm12, %v2495_v3, %v2500_v35  ;;  %v2573_v2 = vpop.permute.xlu1 %2572 }
 0x22e   :  { %v930_v42 = vsel %vm4869_vm11, %v2445_v43, %v2530_v8  ;;  %vm4870_vm13 = vmmov %vm4868_vm5  ;;  %v2051_v26 = vpack.c.bf16 %v1045_v46, %v1044_v6  ;;  %v2549_v3 = vunpack.i.l.bf16 %v2548_v33 }
 0x22f   :  { %v941_v37 = vsel %vm4870_vm13, %v2529_v52, %v2439_v29  ;;  %vm4871_vm10 = vmmov %vm4868_vm5  ;;  %v2156_v61 = vpack.c.bf16 %v930_v42, %v929_v62  ;;  %vm4875_vm13 = vcmp.ge.s32.totalorder %v3172_v38, 0 }
 0x230   :  { %v942_v63 = vsel %vm4871_vm10, %v2530_v8, %v2440_v51  ;;  %vm4872_vm15 = vmpackc.low %vm3972_vm9, %vm3972_vm9  ;;  %v2539_v51 = vunpack.i.l.bf16 %v2538_v57 }
 0x231   :  { %2046 = vmatprep.subr.msk.bf16.mxu0 %vm4872_vm15, %v2045_v39  ;;  %v2153_v56 = vpack.c.bf16 %v942_v63, %v941_v37  ;;  %vm2050_vm8 = vmpackc.low %vm3842_vm2, %vm3842_vm2  ;;  %v2550_v39 = vunpack.i.h.bf16 %v2548_v33  ;;  %v2578_v9 = vpop.permute.xlu1 %2577 }
 0x232   :  { %vm2158_vm9 = vmpackc.low %vm3944_vm4, %vm3944_vm4  ;;  %2049 = vmatpush1.bf16.msk.msra.mxu0 %vm2041_vm1, %v2048_v11  ;;  %v2559_v11 = vunpack.i.l.bf16 %v2558_v10  ;;  %v2579_v57 = vunpack.i.l.bf16 %v2578_v9 }
 0x233   :  { %vm4873_vm5 = vmmov %vm4867_vm12  ;;  %2052 = vmatprep.subr.msk.bf16.mxu0 %vm2050_vm8, %v2051_v26  ;;  %v2604_v26 = vld [vmem:[%s4521_s3 + $0x18] ss:$12 sps:$4 sm:$0xff]  }
 0x234   :  { %v1040_v50 = vsel %vm4873_vm5, %v2494_v22, %v2499_v34  ;;  %vm4874_vm11 = vmpackc.low %vm4069_vm3, %vm4069_vm3  ;;  %v2599_v22 = vld [vmem:[%s4521_s3] ss:$12 sps:$4 sm:$0xff]  }
 0x235   :  { %2154 = vmatprep.subr.msk.bf16.mxu1 %vm4874_vm11, %v2153_v56  ;;  %vm4246_vm10 = vmand %vm3842_vm2, %vm4875_vm13  ;;  %v2162_v29 = vpack.c.bf16 %v1041_v55, %v1040_v50  ;;  %vm4892_vm2 = vcmp.ge.s32.totalorder %v3178_v41, 0 }
 0x236   :  { %2157 = vmatpush1.bf16.msk.msra.mxu1 %vm2149_vm0, %v2156_v61  ;;  %vm2053_vm3 = vmpackc.low %vm4081_vm6, %vm4081_vm6 }
 0x237   :  { %vm4878_vm14 = vmmov %vm4873_vm5  ;;  %2160 = vmatprep.subr.msk.bf16.mxu1 %vm2158_vm9, %v2159_v16  ;;  %2055 = vmatpush1.bf16.msk.msra.mxu0 %vm2053_vm3, %v2054_v17 }
 0x238   :  { %v1050_v43 = vsel %vm4878_vm14, %v2504_v25, %v2534_v21  ;;  %vm4879_vm1 = vmmov %vm4873_vm5  ;;  %vm4883_vm5 = vcmp.lt.s32.totalorder %v3172_v38, 16  ;;  %v2543_v38 = vpop.permute.xlu0 %2542 }
 0x239   :  { %v1051_v14 = vsel %vm4879_vm1, %v2505_v12, %v2535_v1  ;;  %vm2161_vm0 = vmpackc.low %vm4880_vm7, %vm4880_vm7  ;;  %v1054_v34 = vsel %vm4879_vm1, %v2539_v51, %v2504_v25  ;;  %v2545_v19 = vunpack.i.h.bf16 %v2543_v38  ;;  %v2544_v24 = vunpack.i.l.bf16 %v2543_v38 }
 0x23a   :  { %vm4881_vm15 = vmmov %vm4879_vm1  ;;  %v2060_v60 = vpack.c.bf16 %v1051_v14, %v1050_v43  ;;  %2163 = vmatpush1.bf16.msk.msra.mxu1 %vm2161_vm0, %v2162_v29  ;;  %v4904_v38 = vmov 0  }
 0x23b   :  { %v1047_v49 = vsel %vm4881_vm15, %v2535_v1, %v2510_v44  ;;  %vm4882_vm12 = vmmov %vm4879_vm1  ;;  %v2575_v1 = vunpack.i.h.bf16 %v2573_v2 }
 0x23c   :  { %v1046_v27 = vsel %vm4882_vm12, %v2534_v21, %v2509_v36  ;;  %vm4283_vm11 = vmand %vm4246_vm10, %vm4883_vm5  ;;  %vm1136_vm12 = vcmp.lt.s32.totalorder %v2909_v30, 111  ;;  %vm4889_vm5 = vcmp.ge.s32.totalorder %v3175_v40, 0  ;;  %v2553_v15 = vpop.permute.xlu0 %2552  ;;  %v2574_v21 = vunpack.i.l.bf16 %v2573_v2  ;;  %v2607_v30 = vld [vmem:[%s4521_s3 + $0x30] ss:$12 sps:$4 sm:$0xff]  }
 0x23d   :  { %v2057_v13 = vpack.c.bf16 %v1047_v49, %v1046_v27  ;;  %vm4886_vm13 = vmmov %vm4879_vm1  ;;  %v2555_v7 = vunpack.i.h.bf16 %v2553_v15  ;;  %v2554_v8 = vunpack.i.l.bf16 %v2553_v15  ;;  %v1145_v53 = vsel %vm1136_vm12, %v2544_v24, %v2549_v3 }
 0x23e   :  { %v1042_v31 = vsel %vm4886_vm13, %v2509_v36, %v2539_v51  ;;  %vm4887_vm14 = vmmov %vm4879_vm1  ;;  %v1146_v54 = vsel %vm1136_vm12, %v2545_v19, %v2550_v39  ;;  %v1149_v5 = vsel %vm1136_vm12, %v2559_v11, %v2544_v24  ;;  %v1150_v63 = vsel %vm1136_vm12, %v2560_v28, %v2545_v19  ;;  %v2614_v19 = vld [vmem:[%s4521_s3 + $0x50] ss:$12 sps:$4 sm:$0xff]  }
 0x23f   :  { %v1043_v35 = vsel %vm4887_vm14, %v2510_v44, %v2540_v32  ;;  %vm4888_vm10 = vmmov %vm4879_vm1  ;;  %2058 = vmatprep.subr.msk.bf16.mxu0 %vm2050_vm8, %v2057_v13  ;;  %v1142_v58 = vsel %vm1136_vm12, %v2550_v39, %v2555_v7  ;;  %v1141_v46 = vsel %vm1136_vm12, %v2549_v3, %v2554_v8  ;;  %v1137_v62 = vsel %vm1136_vm12, %v2554_v8, %v2559_v11 }
 0x240   :  { %v1055_v48 = vsel %vm4888_vm10, %v2540_v32, %v2505_v12  ;;  %v2168_v4 = vpack.c.bf16 %v1043_v35, %v1042_v31  ;;  %vm2062_vm15 = vmpackc.low %vm4283_vm11, %vm4283_vm11  ;;  %2061 = vmatpush1.bf16.msk.msra.mxu0 %vm2053_vm3, %v2060_v60  ;;  %vm4898_vm3 = vcmp.lt.s32.totalorder %v3175_v40, 16  ;;  %v2063_v40 = vpack.c.bf16 %v1142_v58, %v1141_v46  ;;  %v2563_v37 = vpop.permute.xlu0 %2562  ;;  %v2611_v60 = vld [vmem:[%s4521_s3 + $0x8] ss:$12 sps:$4 sm:$0xff]  }
 0x241   :  { %v2165_v59 = vpack.c.bf16 %v1055_v48, %v1054_v34  ;;  %vm4321_vm13 = vmand %vm3944_vm4, %vm4889_vm5  ;;  %vm4895_vm4 = vcmp.lt.s32.totalorder %v3189_v20, 16  ;;  %v1138_v42 = vsel %vm1136_vm12, %v2555_v7, %v2560_v28  ;;  %v2565_v12 = vunpack.i.h.bf16 %v2563_v37  ;;  %v2610_v34 = vld [vmem:[%s4521_s3 + $0x48] ss:$12 sps:$4 sm:$0xff]   ;;  %v2612_v48 = vld [vmem:[%s4521_s3 + $0x20] ss:$12 sps:$4 sm:$0xff]  }
 0x242   :  { %vm4339_vm8 = vmand %vm4880_vm7, %vm4892_vm2  ;;  %vm4901_vm7 = vcmp.lt.s32.totalorder %v3178_v41, 16  ;;  %v2066_v41 = vpack.c.bf16 %v1146_v54, %v1145_v53  ;;  %v2174_v61 = vpack.c.bf16 %v1138_v42, %v1137_v62  ;;  %v2171_v56 = vpack.c.bf16 %v1150_v63, %v1149_v5  ;;  %2064 = vmatprep.subr.msk.bf16.mxu0 %vm2062_vm15, %v2063_v40 }
 0x243   :  { %2166 = vmatprep.subr.msk.bf16.mxu1 %vm2158_vm9, %v2165_v59  ;;  %vm4352_vm9 = vmand %vm4081_vm6, %vm4895_vm4  ;;  %1443 = vmatmul.mubr.bf16.vlgmr.msra.gmra.mrb[8].mxu0 %v2599_v22  ;;  %v2564_v25 = vunpack.i.l.bf16 %v2563_v37  ;;  %v1148_v44 = vsel %vm1136_vm12, %v2565_v12, %v2575_v1  ;;  %v2580_v36 = vunpack.i.h.bf16 %v2578_v9  ;;  %vm1397_vm11 = vcmask 261120   ;;  %v1305_v59 = vpop.permute.xlu1 %1304 }
 0x244   :  { %2169 = vmatpush1.bf16.msk.msra.mxu1 %vm2161_vm0, %v2168_v4  ;;  %vm4367_vm6 = vmand %vm4321_vm13, %vm4898_vm3  ;;  %1452 = vmatprep.mubr.bf16.mxu0 %v2602_v0  ;;  %v2568_v16 = vpop.permute.xlu0 %2567  ;;  %v2613_v4 = vld [vmem:[%s4521_s3 + $0x38] ss:$12 sps:$4 sm:$0xff]  }
 0x245   :  { %vm4379_vm0 = vmand %vm4339_vm8, %vm4901_vm7  ;;  %v2570_v55 = vunpack.i.h.bf16 %v2568_v16  ;;  %v2569_v50 = vunpack.i.l.bf16 %v2568_v16  ;;  %v1147_v17 = vsel %vm1136_vm12, %v2564_v25, %v2574_v21  ;;  %v1151_v49 = vsel %vm1136_vm12, %v2579_v57, %v2564_v25 }
 0x246   :  { %vm2065_vm14 = vmpackc.low %vm4352_vm9, %vm4352_vm9  ;;  %v2072_v27 = vpack.c.bf16 %v1148_v44, %v1147_v17  ;;  %v1152_v13 = vsel %vm1136_vm12, %v2580_v36, %v2565_v12 }
 0x247   :  { %1589 = vmatmul.mubr.bf16.vlgmr.msra.gmra.mrb[8].mxu1 %v2599_v22  ;;  %vm2170_vm1 = vmpackc.low %vm4367_vm6, %vm4367_vm6  ;;  %2067 = vmatpush1.bf16.msk.msra.mxu0 %vm2065_vm14, %v2066_v41  ;;  %v1144_v43 = vsel %vm1136_vm12, %v2575_v1, %v2570_v55  ;;  %v1143_v14 = vsel %vm1136_vm12, %v2574_v21, %v2569_v50  ;;  %v1139_v51 = vsel %vm1136_vm12, %v2569_v50, %v2579_v57  ;;  %v1315_v63 = vpop.permute.xlu1 %1314 }
 0x248   :  { %1598 = vmatprep.mubr.bf16.mxu1 %v2602_v0  ;;  %vm2173_vm10 = vmpackc.low %vm4379_vm0, %vm4379_vm0  ;;  %2172 = vmatprep.subr.msk.bf16.mxu1 %vm2170_vm1, %v2171_v56  ;;  %v2069_v32 = vpack.c.bf16 %v1144_v43, %v1143_v14  ;;  %v1140_v29 = vsel %vm1136_vm12, %v2570_v55, %v2580_v36  ;;  %v2177_v35 = vpack.c.bf16 %v1152_v13, %v1151_v49  ;;  %v1300_v33 = vpop.permute.xlu0 %1299 }
 0x249   :  { %2175 = vmatpush1.bf16.msk.msra.mxu1 %vm2173_vm10, %v2174_v61  ;;  %v2180_v31 = vpack.c.bf16 %v1140_v29, %v1139_v51 }
 0x24a   :  { %2070 = vmatprep.subr.msk.bf16.mxu0 %vm2062_vm15, %v2069_v32  ;;  %2178 = vmatprep.subr.msk.bf16.mxu1 %vm2170_vm1, %v2177_v35  ;;  %vm1761_vm15 = vcmask 523264  }
 0x24b   :  { %1453 = vmatmul.mubr.bf16.gmra.mrb[12].mxu0 %v2604_v26 }
 0x24c   :  { %1462 = vmatprep.mubr.bf16.mxu0 %v2605_v18  ;;  %2073 = vmatpush1.bf16.msk.msra.mxu0 %vm2065_vm14, %v2072_v27  ;;  %v1310_v42 = vpop.permute.xlu0 %1309 }
 0x24d   :  { %2181 = vmatpush1.bf16.msk.msra.mxu1 %vm2173_vm10, %v2180_v31 }
 0x24f   :  { %1599 = vmatmul.mubr.bf16.gmra.mrb[12].mxu1 %v2604_v26 }
 0x250   :  { %1608 = vmatprep.mubr.bf16.mxu1 %v2605_v18  ;;  %v1320_v31 = vpop.permute.xlu0 %1319 }
 0x253   :  { %1463 = vmatmul.mubr.bf16.gmra.mrb[16].mxu0 %v2607_v30 }
 0x254   :  { %1472 = vmatprep.mubr.bf16.mxu0 %v2608_v23 }
 0x257   :  { %1609 = vmatmul.mubr.bf16.gmra.mrb[16].mxu1 %v2607_v30 }
 0x258   :  { %1618 = vmatprep.mubr.bf16.mxu1 %v2608_v23 }
 0x25b   :  { %1473 = vmatmul.mubr.bf16.gmra.mrb[20].mxu0 %v2610_v34 }
 0x25c   :  { %1515 = vmatprep.mubr.bf16.mxu0 %v4904_v38 }
 0x25f   :  { %1619 = vmatmul.mubr.bf16.gmra.mrb[20].mxu1 %v2610_v34  ;;  %v1325_v34 = vpop.permute.xlu1 %1324 }
 0x260   :  { %1661 = vmatprep.mubr.bf16.mxu1 %v4904_v38 }
 0x263   :  { %1952 = vmatmul.mubr.msk.bf16.vlgmr.msra.gmra.mrb[8].mxu0 %vm1397_vm11, %v2611_v60 }
 0x264   :  { %1525 = vmatprep.mubr.bf16.mxu0 %v4904_v38 }
 0x267   :  { %1956 = vmatmul.mubr.msk.bf16.vlgmr.msra.gmra.mrb[8].mxu1 %vm1397_vm11, %v2611_v60 }
 0x268   :  { %1671 = vmatprep.mubr.bf16.mxu1 %v4904_v38 }
 0x26b   :  { %1953 = vmatmul.mubr.msk.bf16.gmra.mrb[12].mxu0 %vm1397_vm11, %v2612_v48 }
 0x26c   :  { %1535 = vmatprep.mubr.bf16.mxu0 %v4904_v38 }
 0x26f   :  { %1957 = vmatmul.mubr.msk.bf16.gmra.mrb[12].mxu1 %vm1397_vm11, %v2612_v48 }
 0x270   :  { %1681 = vmatprep.mubr.bf16.mxu1 %v4904_v38 }
 0x273   :  { %1954 = vmatmul.mubr.msk.bf16.gmra.mrb[16].mxu0 %vm1397_vm11, %v2613_v4 }
 0x274   :  { %1545 = vmatprep.mubr.bf16.mxu0 %v4904_v38 }
 0x277   :  { %1958 = vmatmul.mubr.msk.bf16.gmra.mrb[16].mxu1 %vm1397_vm11, %v2613_v4 }
 0x278   :  { %1691 = vmatprep.mubr.bf16.mxu1 %v4904_v38 }
 0x27b   :  { %1955 = vmatmul.mubr.msk.bf16.gmra.mrb[20].mxu0 %vm1397_vm11, %v2614_v19 }
 0x27c   :  { %1797 = vmatprep.mubr.bf16.mxu0 %v4904_v38 }
 0x27f   :  { %1959 = vmatmul.mubr.msk.bf16.gmra.mrb[20].mxu1 %vm1397_vm11, %v2614_v19 }
 0x280   :  { %1838 = vmatprep.mubr.bf16.mxu1 %v4904_v38 }
 0x336   :  { %v1517_v24 = vpop.f32.mrb[8].mxu0 }
 0x337   :  { %v2182_v39 = vadd.f32 %v1517_v24, %v1300_v33  ;;  %v1519_v3 = vpop.f32.mrb[9].mxu0 }
 0x338   :  { %v2183_v47 = vadd.f32 %v1519_v3, %v1300_v33  ;;  %v1521_v45 = vpop.f32.mrb[10].mxu0 }
 0x339   :  { %v2184_v8 = vadd.f32 %v1521_v45, %v1305_v59  ;;  %v1523_v52 = vpop.f32.mrb[11].mxu0  ;;  %v1702_v11 = vmax.f32 %v2182_v39, 0.0 }
 0x33a   :  { %v1663_v22 = vpop.f32.mrb[8].mxu1  ;;  %v2185_v53 = vadd.f32 %v1523_v52, %v1305_v59  ;;  %v1703_v46 = vmax.f32 %v2183_v47, 0.0 }
 0x33b   :  { %v2198_v15 = vadd.f32 %v1663_v22, %v1300_v33  ;;  %v1665_v7 = vpop.f32.mrb[9].mxu1  ;;  %v1706_v20 = vmax.f32 %v2184_v8, 0.0 }
 0x33c   :  { %v2199_v10 = vadd.f32 %v1665_v7, %v1300_v33  ;;  %v1667_v0 = vpop.f32.mrb[10].mxu1  ;;  %v1707_v40 = vmax.f32 %v2185_v53, 0.0 }
 0x33d   :  { %v2200_v54 = vadd.f32 %v1667_v0, %v1305_v59  ;;  %v1669_v28 = vpop.f32.mrb[11].mxu1  ;;  %v1704_v6 = vmax.f32 %v2198_v15, 0.0  ;;  %v1735_v5 = vpack.c.bf16 %v1706_v20, %v1702_v11 }
 0x33e   :  { %v2201_v58 = vadd.f32 %v1669_v28, %v1305_v59  ;;  %v1705_v37 = vmax.f32 %v2199_v10, 0.0  ;;  %v1736_v61 = vpack.c.bf16 %v1707_v40, %v1703_v46  ;;  %v1527_v2 = vpop.f32.mrb[12].mxu0  ;;  %v1330_v46 = vpop.permute.xlu0 %1329 }
 0x33f   :  { %v1708_v62 = vmax.f32 %v2200_v54, 0.0  ;;  %v2186_v25 = vadd.f32 %v1527_v2, %v1310_v42  ;;  %v1529_v1 = vpop.f32.mrb[13].mxu0 }
 0x340   :  { %v1709_v41 = vmax.f32 %v2201_v58, 0.0  ;;  %v2187_v26 = vadd.f32 %v1529_v1, %v1310_v42  ;;  %v1531_v55 = vpop.f32.mrb[14].mxu0  ;;  %1765 = vmatprep.subr.bf16.mxu0 %v1736_v61 }
 0x341   :  { %v1737_v12 = vpack.c.bf16 %v1708_v62, %v1704_v6  ;;  %v2188_v9 = vadd.f32 %v1531_v55, %v1315_v63  ;;  %v1533_v17 = vpop.f32.mrb[15].mxu0  ;;  %1766 = vmatpush1.bf16.msra.mxu0 %v1735_v5  ;;  %v1710_v14 = vmax.f32 %v2186_v25, 0.0 }
 0x342   :  { %v1738_v56 = vpack.c.bf16 %v1709_v41, %v1705_v37  ;;  %v1673_v21 = vpop.f32.mrb[12].mxu1  ;;  %v2189_v36 = vadd.f32 %v1533_v17, %v1315_v63  ;;  %v1711_v29 = vmax.f32 %v2187_v26, 0.0 }
 0x343   :  { %v2202_v16 = vadd.f32 %v1673_v21, %v1310_v42  ;;  %v1675_v50 = vpop.f32.mrb[13].mxu1  ;;  %v1714_v32 = vmax.f32 %v2188_v9, 0.0 }
 0x344   :  { %v2203_v18 = vadd.f32 %v1675_v50, %v1310_v42  ;;  %v1677_v44 = vpop.f32.mrb[14].mxu1  ;;  %1806 = vmatprep.subr.bf16.mxu1 %v1738_v56  ;;  %v1715_v27 = vmax.f32 %v2189_v36, 0.0  ;;  %v1335_v42 = vpop.permute.xlu1 %1334 }
 0x345   :  { %v2204_v57 = vadd.f32 %v1677_v44, %v1315_v63  ;;  %v1679_v43 = vpop.f32.mrb[15].mxu1  ;;  %1807 = vmatpush1.bf16.msra.mxu1 %v1737_v12  ;;  %v1712_v49 = vmax.f32 %v2202_v16, 0.0  ;;  %v1739_v35 = vpack.c.bf16 %v1714_v32, %v1710_v14 }
 0x346   :  { %v2205_v51 = vadd.f32 %v1679_v43, %v1315_v63  ;;  %v1713_v30 = vmax.f32 %v2203_v18, 0.0  ;;  %v1740_v38 = vpack.c.bf16 %v1715_v27, %v1711_v29  ;;  %v1537_v48 = vpop.f32.mrb[16].mxu0 }
 0x347   :  { %v1716_v13 = vmax.f32 %v2204_v57, 0.0  ;;  %v2190_v19 = vadd.f32 %v1537_v48, %v1320_v31  ;;  %v1539_v33 = vpop.f32.mrb[17].mxu0 }
 0x348   :  { %v1717_v23 = vmax.f32 %v2205_v51, 0.0  ;;  %v2191_v24 = vadd.f32 %v1539_v33, %v1320_v31  ;;  %v1541_v3 = vpop.f32.mrb[18].mxu0  ;;  %1767 = vmatprep.subr.bf16.mxu0 %v1740_v38 }
 0x349   :  { %v1741_v60 = vpack.c.bf16 %v1716_v13, %v1712_v49  ;;  %v2192_v47 = vadd.f32 %v1541_v3, %v1325_v34  ;;  %v1543_v45 = vpop.f32.mrb[19].mxu0  ;;  %1768 = vmatpush1.bf16.msra.mxu0 %v1739_v35  ;;  %v1718_v0 = vmax.f32 %v2190_v19, 0.0 }
 0x34a   :  { %v1742_v4 = vpack.c.bf16 %v1717_v23, %v1713_v30  ;;  %v1683_v59 = vpop.f32.mrb[16].mxu1  ;;  %v2193_v8 = vadd.f32 %v1543_v45, %v1325_v34  ;;  %v1719_v28 = vmax.f32 %v2191_v24, 0.0  ;;  %v1734_v30 = vld [vmem:[%s4523_s5] sm:$0x1]  ;;  %v4905_v23 = vlaneseq  ;;  %s2691_s5 = smov [#allocation7]  }
 0x34b   :  { %v2206_v39 = vadd.f32 %v1683_v59, %v1320_v31  ;;  %v1685_v22 = vpop.f32.mrb[17].mxu1  ;;  %v1722_v53 = vmax.f32 %v2192_v47, 0.0  ;;  %s1911_s20 = sshll.u32 %s2691_s5, 4  ;;  %s1912_s20 = int_to_ptr.vmem [resolvable:$true] %s1911_s20 }
 0x34c   :  { %v2207_v15 = vadd.f32 %v1685_v22, %v1320_v31  ;;  %v1687_v7 = vpop.f32.mrb[18].mxu1  ;;  %1808 = vmatprep.subr.bf16.mxu1 %v1742_v4  ;;  %v1723_v20 = vmax.f32 %v2193_v8, 0.0  ;;  %vm1902_vm12 = vcmp.lt.s32.totalorder %v4905_v23, 512  ;;  %s2653_s21 = scalar_lea.vmem %s1912_s20, 64  ;;  %p2658_p9 = scmp.lt.s32.totalorder %s1912_s20, %s1912_s20 }
 0x34d   :  { %v2208_v10 = vadd.f32 %v1687_v7, %v1325_v34  ;;  %v1689_v52 = vpop.f32.mrb[19].mxu1  ;;  %1809 = vmatpush1.bf16.msra.mxu1 %v1741_v60  ;;  %v1720_v11 = vmax.f32 %v2206_v39, 0.0  ;;  %v1743_v6 = vpack.c.bf16 %v1722_v53, %v1718_v0  ;;  %v1755_v60 = vpop.permute.xlu0 %1754  ;;  %p2654_p8 = scmp.ne.s32.totalorder %s1912_s20, %s2653_s21  ;;  %p2659_p10 = scmp.lt.s32.totalorder %s2653_s21, %s2653_s21 }
 0x34e   :  { %v2209_v54 = vadd.f32 %v1689_v52, %v1325_v34  ;;  %v1721_v40 = vmax.f32 %v2207_v15, 0.0  ;;  %v1744_v5 = vpack.c.bf16 %v1723_v20, %v1719_v28  ;;  %v1547_v41 = vpop.f32.mrb[20].mxu0  ;;  %v1758_v34 = vshrl.u32 %v4905_v23, 7 }
 0x34f   :  { %v1724_v58 = vmax.f32 %v2208_v10, 0.0  ;;  %v2194_v61 = vadd.f32 %v1547_v41, %v1330_v46  ;;  %v1549_v12 = vpop.f32.mrb[21].mxu0  ;;  %p2660_p11 = por %p2659_p10, %p2658_p9 }
 0x350   :  { %v1725_v62 = vmax.f32 %v2209_v54, 0.0  ;;  %v2195_v56 = vadd.f32 %v1549_v12, %v1330_v46  ;;  %v1551_v1 = vpop.f32.mrb[22].mxu0  ;;  %1769 = vmatprep.subr.bf16.mxu0 %v1744_v5  ;;  %v1759_v38 = vsub.s32 0, %v1758_v34 }
 0x351   :  { %v1745_v37 = vpack.c.bf16 %v1724_v58, %v1720_v11  ;;  %v2196_v26 = vadd.f32 %v1551_v1, %v1335_v42  ;;  %v1553_v55 = vpop.f32.mrb[23].mxu0  ;;  %1770 = vmatpush1.bf16.msra.mxu0 %v1743_v6  ;;  %v1726_v44 = vmax.f32 %v2194_v61, 0.0  ;;  %p2661_p12 = pnand %p2660_p11, %p2654_p8 }
 0x352   :  { %v1746_v63 = vpack.c.bf16 %v1725_v62, %v1721_v40  ;;  %v1693_v2 = vpop.f32.mrb[20].mxu1  ;;  %v2197_v9 = vadd.f32 %v1553_v55, %v1335_v42  ;;  %v1727_v43 = vmax.f32 %v2195_v56, 0.0  ;;  %v1760_v48 = vrot.slane %v1755_v60, %v1759_v38 }
 0x353   :  { %v2210_v25 = vadd.f32 %v1693_v2, %v1330_v46  ;;  %v1695_v21 = vpop.f32.mrb[21].mxu1  ;;  %v1730_v36 = vmax.f32 %v2196_v26, 0.0  ;;  %v2690_v40 = vmov 1966171168  }
 0x354   :  { %v2211_v16 = vadd.f32 %v1695_v21, %v1330_v46  ;;  %v1697_v50 = vpop.f32.mrb[22].mxu1  ;;  %1810 = vmatprep.subr.bf16.mxu1 %v1746_v63  ;;  %v1731_v32 = vmax.f32 %v2197_v9, 0.0  ;;  %v1878_v62 = vunpack.c.l.s4 %v2690_v40 }
 0x355   :  { %v2212_v18 = vadd.f32 %v1697_v50, %v1335_v42  ;;  %v1699_v17 = vpop.f32.mrb[23].mxu1  ;;  %1811 = vmatpush1.bf16.msra.mxu1 %v1745_v37  ;;  %v1728_v14 = vmax.f32 %v2210_v25, 0.0  ;;  %v1747_v29 = vpack.c.bf16 %v1730_v36, %v1726_v44 }
 0x356   :  { %v2213_v57 = vadd.f32 %v1699_v17, %v1335_v42  ;;  %v1729_v49 = vmax.f32 %v2211_v16, 0.0  ;;  %v1748_v13 = vpack.c.bf16 %v1731_v32, %v1727_v43  ;;  %v1879_v42 = vunpack.c.0.s8 %v1878_v62 }
 0x357   :  { %v1732_v51 = vmax.f32 %v2212_v18, 0.0 }
 0x358   :  { %v1733_v27 = vmax.f32 %v2213_v57, 0.0  ;;  %1771 = vmatprep.subr.bf16.mxu0 %v1748_v13  ;;  %v1882_v37 = vsub.s32 %v1879_v42, %v1758_v34 }
 0x359   :  { %v1749_v31 = vpack.c.bf16 %v1732_v51, %v1728_v14  ;;  %1772 = vmatpush1.bf16.msra.mxu0 %v1747_v29 }
 0x35a   :  { %v1750_v35 = vpack.c.bf16 %v1733_v27, %v1729_v49 }
 0x35c   :  { %1812 = vmatprep.subr.bf16.mxu1 %v1750_v35  ;;  %1960 = vmatmul.mubr.msk.bf16.vlgmr.msra.gmra.mrb[24].mxu0 %vm1761_vm15, %v1734_v30 }
 0x35d   :  { %1813 = vmatpush1.bf16.msra.mxu1 %v1749_v31 }
 0x360   :  { %1961 = vmatmul.mubr.msk.bf16.vlgmr.msra.gmra.mrb[24].mxu1 %vm1761_vm15, %v1734_v30 }
 0x42f   :  { %v1799_v4 = vpop.f32.mrb[24].mxu0 }
 0x430   :  { %v1800_v19 = vadd.f32 %v1799_v4, %v1760_v48  ;;  %v1801_v33 = vpop.f32.mrb[25].mxu0 }
 0x431   :  { %v1802_v24 = vadd.f32 %v1801_v33, %v1760_v48  ;;  %v1803_v22 = vpop.f32.mrb[26].mxu0 }
 0x432   :  { %v1962_v47 = vmul.f32 -1.442695, %v1800_v19  ;;  %v1804_v7 = vpop.f32.mrb[27].mxu0 }
 0x433   :  { %v1840_v59 = vpop.f32.mrb[24].mxu1  ;;  %v1963_v8 = vmul.f32 -1.442695, %v1802_v24 }
 0x434   :  { %v1841_v39 = vadd.f32 %v1840_v59, %v1760_v48  ;;  %v1842_v3 = vpop.f32.mrb[25].mxu1  ;;  %2615 = vpow2.f32 %v1962_v47 }
 0x435   :  { %v1843_v15 = vadd.f32 %v1842_v3, %v1760_v48  ;;  %v1844_v45 = vpop.f32.mrb[26].mxu1  ;;  %2617 = vpow2.f32 %v1963_v8 }
 0x436   :  { %v1964_v10 = vmul.f32 -1.442695, %v1841_v39  ;;  %v1845_v52 = vpop.f32.mrb[27].mxu1 }
 0x437   :  { %v1965_v0 = vmul.f32 -1.442695, %v1843_v15 }
 0x438   :  { %2619 = vpow2.f32 %v1964_v10 }
 0x439   :  { %2621 = vpow2.f32 %v1965_v0 }
 0x43e   :  { %v2616_v53 = vpop.eup %2615 }
 0x43f   :  { %v2618_v54 = vpop.eup %2617  ;;  %v1859_v28 = vadd.f32 1.0, %v2616_v53 }
 0x440   :  { %v1860_v20 = vadd.f32 1.0, %v2618_v54 }
 0x441   :  { %2623 = vrcp.f32 %v1859_v28 }
 0x442   :  { %v2620_v11 = vpop.eup %2619  ;;  %2625 = vrcp.f32 %v1860_v20 }
 0x443   :  { %v2622_v58 = vpop.eup %2621  ;;  %v1861_v46 = vadd.f32 1.0, %v2620_v11 }
 0x444   :  { %v1862_v6 = vadd.f32 1.0, %v2622_v58 }
 0x445   :  { %2627 = vrcp.f32 %v1861_v46 }
 0x446   :  { %2629 = vrcp.f32 %v1862_v6 }
 0x44b   :  { %v2624_v5 = vpop.eup %2623 }
 0x44c   :  { %v2626_v41 = vpop.eup %2625 }
 0x44d   :  { %v1875_v61 = vcombine.low %v2624_v5, %v2626_v41 }
 0x44f   :  { %v2628_v63 = vpop.eup %2627  ;;  %v1883_v56 = vrot.slane %v1875_v61, %v1882_v37 }
 0x450   :  { %v2630_v12 = vpop.eup %2629 }
 0x451   :  { %v1876_v2 = vcombine.low %v2628_v63, %v2630_v12 }
 0x453   :  { %v1890_v25 = vrot.slane %v1876_v2, %v1882_v37 }
 0x455   :  { %v1891_v1 = vcombine.low %v1883_v56, %v1890_v25 }
 0x457   :  { %v1898_v21 = vrot.slane %v1891_v1, %v1882_v37 }
 0x459   :  { %1904 = vst.msk [vmem:[#allocation7] sm:$0xf] %vm1902_vm12, %v1898_v21 }
 0x45a   :  { %2664 = shalt.err (!%p2661_p12)
}
 0x45b   :  { %s2665_s24 = scalar_lea.hbm %s4525_s7, 64 }
 0x45c   :  { %p2666_p13 = scmp.ne.s32.totalorder %s4525_s7, %s2665_s24  ;;  %p2669_p0 = scmp.lt.u32.totalorder %s2665_s24, %s4525_s7 }
 0x45e   :  { %p2671_p1 = pnand %p2669_p0, %p2666_p13 }
 0x460   :  { %2674 = shalt.err (!%p2671_p1)
}
 0x461   :  { %1914 = dma.vmem_to_hbm [thread:$0]  %s1912_s20, 64, %s4525_s7, [#allocation6]  }
 0x462   :  { %2677 = dma.done.wait [#allocation6], 64  }
 0x463   :  { %2678 = vsyncadd [#allocation6], 4294967232 }
 0x464   :  { %1918 = vsyncpa [#allocation5], 1 }
 0x465   :  { %1919 = vsyncpa [#allocation6], 1 }

</bundles_post_ra>
